<compile_context>
chip_gen: v7x
topology: tpu7x:2x2x1
jax: 0.10.0
libtpu: 0.0.40
codegen_flags: <defaults>
</compile_context>

<pallas_src>
from functools import partial

import numpy as np
import jax
import jax.numpy as jnp
from jax.experimental import pallas as pl
from jax.experimental.pallas import tpu as pltpu


# ----------------------------- Pallas kernel --------------------------------

def gcn_fused_kernel(at_ref, xt_ref,
                     wr1_ref, wq1_ref, bc1_ref,
                     w5_ref, bc5_ref,
                     w1_ref, b1_ref, w2_ref, b2_ref,
                     w3_ref, b3_ref, w4_ref, b4_ref,
                     o_ref, *, batch_size, num_nodes):
    f32 = jnp.float32
    bf16 = jnp.bfloat16

    at = at_ref[...]            # (N, N) bf16, At = A^T (exact: entries are 0/1)
    xt = xt_ref[...]            # (1, N) f32,  x^T  (Cin == 1)

    # ---- conv1 + ReLU --------------------------------------------------------
    # (A @ x)^T = x^T @ A^T : the only MXU op of this stage (M=1, K=N, N=N, bf16).
    y1 = jnp.dot(xt.astype(bf16), at, preferred_element_type=f32)            # (1, N)
    # Cin == 1  =>  W_rel @ y1 and W_root @ x^T are outer products -> VPU broadcasts.
    h1 = jnp.maximum(wr1_ref[...] * y1 + wq1_ref[...] * xt + bc1_ref[...], 0.0)   # (H, N)

    # ---- conv5 (no activation) -----------------------------------------------
    # Stacked [W_rel5; W_root5] (2, H): one small matmul instead of two M=1,K=H dots.
    tq5 = jnp.dot(w5_ref[...].astype(bf16), h1.astype(bf16),
                  preferred_element_type=f32)                                 # (2, N)
    t5, root5 = tq5[0:1, :], tq5[1:2, :]
    agg5 = jnp.dot(t5.astype(bf16), at, preferred_element_type=f32)           # (1, N)
    h2 = agg5 + root5 + bc5_ref[...]                                          # (1, N)

    # ---- x.view(batch_size, num_nodes): aligned lane slices + sublane concat --
    z = jnp.concatenate(
        [h2[:, b * num_nodes:(b + 1) * num_nodes] for b in range(batch_size)],
        axis=0)                                                               # (B, num_nodes)

    # ---- MLP head (bf16 operands, f32 accumulation) ----------------------------
    # TODO(synk): F.dropout(p=0.5) omitted — module is evaluated in eval mode (identity).
    g = jnp.maximum(
        jnp.dot(z.astype(bf16), w1_ref[...], preferred_element_type=f32) + b1_ref[...], 0.0)
    g = jnp.maximum(
        jnp.dot(g.astype(bf16), w2_ref[...], preferred_element_type=f32) + b2_ref[...], 0.0)
    g = jnp.maximum(
        jnp.dot(g.astype(bf16), w3_ref[...], preferred_element_type=f32) + b3_ref[...], 0.0)
    logits = jnp.dot(g.astype(bf16), w4_ref[...], preferred_element_type=f32) + b4_ref[...]

    # ---- log_softmax over dim=1 -------------------------------------------------
    m = jnp.max(logits, axis=-1, keepdims=True)
    lse = m + jnp.log(jnp.sum(jnp.exp(logits - m), axis=-1, keepdims=True))
    o_ref[...] = logits - lse


# ------------------------------ Wrapper --------------------------------------

def gcn_forward(at, xt, conv1_p, w5_stack, bc5, lin_p, *, batch_size, num_nodes,
                output_channels):
    wr1, wq1, bc1 = conv1_p
    args = [at, xt, wr1, wq1, bc1, w5_stack, bc5]
    for w, b in lin_p:
        args += [w, b]

    n_total = at.shape[0]
    hid = wr1.shape[0]
    # Cost model: two (1,N)@(N,N) aggregations dominate; everything else is noise.
    flops = 2.0 * 2.0 * n_total * n_total            # agg1 + agg5 (MXU)
    flops += 2.0 * 2.0 * hid * n_total               # stacked conv5 small matmul
    flops += 5.0 * hid * n_total                     # conv1 VPU broadcasts + relu
    for w, _ in lin_p:
        flops += 2.0 * batch_size * w.shape[0] * w.shape[1]
    bytes_accessed = sum(int(np.prod(a.shape)) * a.dtype.itemsize for a in args)
    bytes_accessed += batch_size * output_channels * 4

    # NOTE(scaling): whole-adjacency-resident design is fine at n_total=512 (~0.6 MiB VMEM)
    # on v5e/v6e/v7x. TODO(synk): if n_total grows (>~4K under the 32 MiB scoped default,
    # earlier on v7x's 64 MiB physical VMEM), switch At to a column-tiled grid
    # (pl.Buffered(2..3), dimension_semantics=("parallel",)) and set vmem_limit_bytes.
    vmem = pl.BlockSpec(memory_space=pltpu.MemorySpace.VMEM)

    return pl.pallas_call(
        partial(gcn_fused_kernel, batch_size=batch_size, num_nodes=num_nodes),
        out_shape=jax.ShapeDtypeStruct((batch_size, output_channels), jnp.float32),
        in_specs=[vmem] * len(args),
        out_specs=vmem,
        cost_estimate=pl.CostEstimate(
            flops=int(flops),
            transcendentals=int(batch_size * (output_channels + 1)),
            bytes_accessed=int(bytes_accessed)),
    )(*args)


# ------------------------------ Model glue -----------------------------------

def _uniform(key, shape, fan_in):
    bound = 1.0 / np.sqrt(float(fan_in))
    return jax.random.uniform(key, shape, jnp.float32, -bound, bound)


def init_graphconv(key, cin, cout):
    """(W_rel, W_root, b_rel) in (out, in) / (out, 1) orientation (transposed kernel form)."""
    k1, k2, k3 = jax.random.split(key, 3)
    w_rel = _uniform(k1, (cout, cin), cin)     # lin_rel weight (with bias)
    w_root = _uniform(k2, (cout, cin), cin)    # lin_root weight (bias=False)
    b_rel = _uniform(k3, (cout, 1), cin)
    return w_rel, w_root, b_rel


def init_linear(key, fan_in, fan_out):
    """nn.Linear-style init; weight stored as (in, out) for x @ W, bias as (1, out)."""
    kw, kb = jax.random.split(key)
    return _uniform(kw, (fan_in, fan_out), fan_in), _uniform(kb, (1, fan_out), fan_in)


def build_transposed_adjacency(edge_index, n_total):
    """At[src, dst] = #edges(src->dst), so A @ x == (x^T @ At)^T. Stored bf16 (exact 0/1)."""
    src, dst = edge_index[0], edge_index[1]
    a_t = jnp.zeros((n_total, n_total), jnp.float32).at[src, dst].add(1.0)
    return a_t.astype(jnp.bfloat16)


# --------------------------------- Main ---------------------------------------

if __name__ == "__main__":
    # Model hyper-params (x.view(batch_size, N/batch_size) implies input_channels == 1).
    input_channels = 1
    output_channels = 2
    hidden_channels = 32          # hidden // 4 = 8
    num_nodes = 256               # per graph; multiple of 128 -> aligned lane slicing
    batch_size = 2
    n_total = num_nodes * batch_size

    key = jax.random.PRNGKey(0)
    k_x, k_c1, k_c5, k_l1, k_l2, k_l3, k_l4 = jax.random.split(key, 7)

    # Deterministic parameters.
    conv1_p = init_graphconv(k_c1, input_channels, hidden_channels // 4)   # (8,1),(8,1),(8,1)
    wr5, wq5, bc5 = init_graphconv(k_c5, hidden_channels // 4, input_channels)
    w5_stack = jnp.concatenate([wr5, wq5], axis=0)                         # (2, 8): [W_rel5; W_root5]

    lin_p = (
        init_linear(k_l1, num_nodes, num_nodes // 5),
        init_linear(k_l2, num_nodes // 5, num_nodes // 25),
        init_linear(k_l3, num_nodes // 25, num_nodes // 125),
        init_linear(k_l4, num_nodes // 125, output_channels),
    )
    # Head weights pre-cast to bf16 (single MXU pass per head matmul); biases stay f32.
    lin_p = tuple((w.astype(jnp.bfloat16), b) for w, b in lin_p)

    # Deterministic inputs: node features + bidirectional ring graph per sample.
    x = jax.random.normal(k_x, (n_total, input_channels), jnp.float32)
    xt = x.T                                              # (1, N_total) for the kernel

    src, dst = [], []
    for g in range(batch_size):
        off = g * num_nodes
        for i in range(num_nodes):
            j = (i + 1) % num_nodes
            src += [off + i, off + j]
            dst += [off + j, off + i]
    edge_index = jnp.array([src, dst], dtype=jnp.int32)   # (2, 2*num_nodes*batch)
    batch = jnp.repeat(jnp.arange(batch_size, dtype=jnp.int32), num_nodes)
    # batch_size is passed statically (hoisted; no jnp.unique host sync inside the forward).

    # Adjacency built once, outside the (jitted) forward.
    at = build_transposed_adjacency(edge_index, n_total)

    fwd = jax.jit(partial(gcn_forward, batch_size=batch_size, num_nodes=num_nodes,
                          output_channels=output_channels))
    out = jax.block_until_ready(fwd(at, xt, conv1_p, w5_stack, bc5, lin_p))

    assert out.shape == (batch_size, output_channels)
    # rows of log_softmax exponentiate to ~1
    assert jnp.allclose(jnp.exp(out).sum(axis=1), 1.0, atol=1e-4)
    print("KERNEL_OK")
</pallas_src>

<mosaic_0001>
module attributes {stable_mosaic.version = 11 : i64} {
  func.func @gcn_fused_kernel(%arg0: memref<512x512xbf16, #tpu.memory_space<vmem>>, %arg1: memref<1x512xf32, #tpu.memory_space<vmem>>, %arg2: memref<8x1xf32, #tpu.memory_space<vmem>>, %arg3: memref<8x1xf32, #tpu.memory_space<vmem>>, %arg4: memref<8x1xf32, #tpu.memory_space<vmem>>, %arg5: memref<2x8xf32, #tpu.memory_space<vmem>>, %arg6: memref<1x1xf32, #tpu.memory_space<vmem>>, %arg7: memref<256x51xbf16, #tpu.memory_space<vmem>>, %arg8: memref<1x51xf32, #tpu.memory_space<vmem>>, %arg9: memref<51x10xbf16, #tpu.memory_space<vmem>>, %arg10: memref<1x10xf32, #tpu.memory_space<vmem>>, %arg11: memref<10x2xbf16, #tpu.memory_space<vmem>>, %arg12: memref<1x2xf32, #tpu.memory_space<vmem>>, %arg13: memref<2x2xbf16, #tpu.memory_space<vmem>>, %arg14: memref<1x2xf32, #tpu.memory_space<vmem>>, %arg15: memref<2x2xf32, #tpu.memory_space<vmem>>) attributes {dimension_semantics = [], scalar_prefetch = 0 : i64, scratch_operands = 0 : i64, tpu.core_type = #tpu.core_type<tc>} {
    %c0 = arith.constant 0 : index
    %c0_0 = arith.constant 0 : index
    %0 = vector.load %arg0[%c0, %c0_0] : memref<512x512xbf16, #tpu.memory_space<vmem>>, vector<512x512xbf16>
    %c0_1 = arith.constant 0 : index
    %c0_2 = arith.constant 0 : index
    %1 = vector.load %arg1[%c0_1, %c0_2] : memref<1x512xf32, #tpu.memory_space<vmem>>, vector<1x512xf32>
    %2 = arith.truncf %1 : vector<1x512xf32> to vector<1x512xbf16>
    %cst = arith.constant dense<0.000000e+00> : vector<1x512xf32>
    %3 = tpu.matmul %2, %0, %cst {dimension_numbers = #tpu.dot_dimension_numbers<[1], [0], [0], [1], [0, 0, 1, 1], [], []>} : vector<1x512xbf16>, vector<512x512xbf16>, vector<1x512xf32> -> vector<1x512xf32>
    %c0_3 = arith.constant 0 : index
    %c0_4 = arith.constant 0 : index
    %4 = vector.load %arg2[%c0_3, %c0_4] : memref<8x1xf32, #tpu.memory_space<vmem>>, vector<8x1xf32>
    %5 = vector.broadcast %4 : vector<8x1xf32> to vector<8x512xf32>
    %6 = vector.broadcast %3 : vector<1x512xf32> to vector<8x512xf32>
    %7 = arith.mulf %5, %6 : vector<8x512xf32>
    %c0_5 = arith.constant 0 : index
    %c0_6 = arith.constant 0 : index
    %8 = vector.load %arg3[%c0_5, %c0_6] : memref<8x1xf32, #tpu.memory_space<vmem>>, vector<8x1xf32>
    %9 = vector.broadcast %8 : vector<8x1xf32> to vector<8x512xf32>
    %10 = vector.broadcast %1 : vector<1x512xf32> to vector<8x512xf32>
    %11 = arith.mulf %9, %10 : vector<8x512xf32>
    %12 = arith.addf %7, %11 : vector<8x512xf32>
    %c0_7 = arith.constant 0 : index
    %c0_8 = arith.constant 0 : index
    %13 = vector.load %arg4[%c0_7, %c0_8] : memref<8x1xf32, #tpu.memory_space<vmem>>, vector<8x1xf32>
    %14 = vector.broadcast %13 : vector<8x1xf32> to vector<8x512xf32>
    %15 = arith.addf %12, %14 : vector<8x512xf32>
    %cst_9 = arith.constant 0.000000e+00 : f32
    %16 = vector.broadcast %cst_9 : f32 to vector<8x512xf32>
    %17 = arith.maximumf %15, %16 : vector<8x512xf32>
    %c0_10 = arith.constant 0 : index
    %c0_11 = arith.constant 0 : index
    %18 = vector.load %arg5[%c0_10, %c0_11] : memref<2x8xf32, #tpu.memory_space<vmem>>, vector<2x8xf32>
    %19 = arith.truncf %18 : vector<2x8xf32> to vector<2x8xbf16>
    %20 = arith.truncf %17 : vector<8x512xf32> to vector<8x512xbf16>
    %cst_12 = arith.constant dense<0.000000e+00> : vector<2x512xf32>
    %21 = tpu.matmul %19, %20, %cst_12 {dimension_numbers = #tpu.dot_dimension_numbers<[1], [0], [0], [1], [0, 0, 1, 1], [], []>} : vector<2x8xbf16>, vector<8x512xbf16>, vector<2x512xf32> -> vector<2x512xf32>
    %22 = vector.extract_strided_slice %21 {offsets = [0, 0], sizes = [1, 512], strides = [1, 1]} : vector<2x512xf32> to vector<1x512xf32>
    %23 = vector.extract_strided_slice %21 {offsets = [1, 0], sizes = [1, 512], strides = [1, 1]} : vector<2x512xf32> to vector<1x512xf32>
    %24 = arith.truncf %22 : vector<1x512xf32> to vector<1x512xbf16>
    %cst_13 = arith.constant dense<0.000000e+00> : vector<1x512xf32>
    %25 = tpu.matmul %24, %0, %cst_13 {dimension_numbers = #tpu.dot_dimension_numbers<[1], [0], [0], [1], [0, 0, 1, 1], [], []>} : vector<1x512xbf16>, vector<512x512xbf16>, vector<1x512xf32> -> vector<1x512xf32>
    %26 = arith.addf %25, %23 : vector<1x512xf32>
    %c0_14 = arith.constant 0 : index
    %c0_15 = arith.constant 0 : index
    %27 = vector.load %arg6[%c0_14, %c0_15] : memref<1x1xf32, #tpu.memory_space<vmem>>, vector<1x1xf32>
    %28 = vector.broadcast %27 : vector<1x1xf32> to vector<1x512xf32>
    %29 = arith.addf %26, %28 : vector<1x512xf32>
    %30 = vector.extract_strided_slice %29 {offsets = [0, 0], sizes = [1, 256], strides = [1, 1]} : vector<1x512xf32> to vector<1x256xf32>
    %31 = vector.extract_strided_slice %29 {offsets = [0, 256], sizes = [1, 256], strides = [1, 1]} : vector<1x512xf32> to vector<1x256xf32>
    %32 = tpu.concatenate %30, %31 in 0 : vector<1x256xf32>, vector<1x256xf32> -> vector<2x256xf32>
    %33 = arith.truncf %32 : vector<2x256xf32> to vector<2x256xbf16>
    %c0_16 = arith.constant 0 : index
    %c0_17 = arith.constant 0 : index
    %34 = vector.load %arg7[%c0_16, %c0_17] : memref<256x51xbf16, #tpu.memory_space<vmem>>, vector<256x51xbf16>
    %cst_18 = arith.constant dense<0.000000e+00> : vector<2x51xf32>
    %35 = tpu.matmul %33, %34, %cst_18 {dimension_numbers = #tpu.dot_dimension_numbers<[1], [0], [0], [1], [0, 0, 1, 1], [], []>} : vector<2x256xbf16>, vector<256x51xbf16>, vector<2x51xf32> -> vector<2x51xf32>
    %c0_19 = arith.constant 0 : index
    %c0_20 = arith.constant 0 : index
    %36 = vector.load %arg8[%c0_19, %c0_20] : memref<1x51xf32, #tpu.memory_space<vmem>>, vector<1x51xf32>
    %37 = vector.broadcast %36 : vector<1x51xf32> to vector<2x51xf32>
    %38 = arith.addf %35, %37 : vector<2x51xf32>
    %cst_21 = arith.constant 0.000000e+00 : f32
    %39 = vector.broadcast %cst_21 : f32 to vector<2x51xf32>
    %40 = arith.maximumf %38, %39 : vector<2x51xf32>
    %41 = arith.truncf %40 : vector<2x51xf32> to vector<2x51xbf16>
    %c0_22 = arith.constant 0 : index
    %c0_23 = arith.constant 0 : index
    %42 = vector.load %arg9[%c0_22, %c0_23] : memref<51x10xbf16, #tpu.memory_space<vmem>>, vector<51x10xbf16>
    %cst_24 = arith.constant dense<0.000000e+00> : vector<2x10xf32>
    %43 = tpu.matmul %41, %42, %cst_24 {dimension_numbers = #tpu.dot_dimension_numbers<[1], [0], [0], [1], [0, 0, 1, 1], [], []>} : vector<2x51xbf16>, vector<51x10xbf16>, vector<2x10xf32> -> vector<2x10xf32>
    %c0_25 = arith.constant 0 : index
    %c0_26 = arith.constant 0 : index
    %44 = vector.load %arg10[%c0_25, %c0_26] : memref<1x10xf32, #tpu.memory_space<vmem>>, vector<1x10xf32>
    %45 = vector.broadcast %44 : vector<1x10xf32> to vector<2x10xf32>
    %46 = arith.addf %43, %45 : vector<2x10xf32>
    %cst_27 = arith.constant 0.000000e+00 : f32
    %47 = vector.broadcast %cst_27 : f32 to vector<2x10xf32>
    %48 = arith.maximumf %46, %47 : vector<2x10xf32>
    %49 = arith.truncf %48 : vector<2x10xf32> to vector<2x10xbf16>
    %c0_28 = arith.constant 0 : index
    %c0_29 = arith.constant 0 : index
    %50 = vector.load %arg11[%c0_28, %c0_29] : memref<10x2xbf16, #tpu.memory_space<vmem>>, vector<10x2xbf16>
    %cst_30 = arith.constant dense<0.000000e+00> : vector<2x2xf32>
    %51 = tpu.matmul %49, %50, %cst_30 {dimension_numbers = #tpu.dot_dimension_numbers<[1], [0], [0], [1], [0, 0, 1, 1], [], []>} : vector<2x10xbf16>, vector<10x2xbf16>, vector<2x2xf32> -> vector<2x2xf32>
    %c0_31 = arith.constant 0 : index
    %c0_32 = arith.constant 0 : index
    %52 = vector.load %arg12[%c0_31, %c0_32] : memref<1x2xf32, #tpu.memory_space<vmem>>, vector<1x2xf32>
    %53 = vector.broadcast %52 : vector<1x2xf32> to vector<2x2xf32>
    %54 = arith.addf %51, %53 : vector<2x2xf32>
    %cst_33 = arith.constant 0.000000e+00 : f32
    %55 = vector.broadcast %cst_33 : f32 to vector<2x2xf32>
    %56 = arith.maximumf %54, %55 : vector<2x2xf32>
    %57 = arith.truncf %56 : vector<2x2xf32> to vector<2x2xbf16>
    %c0_34 = arith.constant 0 : index
    %c0_35 = arith.constant 0 : index
    %58 = vector.load %arg13[%c0_34, %c0_35] : memref<2x2xbf16, #tpu.memory_space<vmem>>, vector<2x2xbf16>
    %cst_36 = arith.constant dense<0.000000e+00> : vector<2x2xf32>
    %59 = tpu.matmul %57, %58, %cst_36 {dimension_numbers = #tpu.dot_dimension_numbers<[1], [0], [0], [1], [0, 0, 1, 1], [], []>} : vector<2x2xbf16>, vector<2x2xbf16>, vector<2x2xf32> -> vector<2x2xf32>
    %c0_37 = arith.constant 0 : index
    %c0_38 = arith.constant 0 : index
    %60 = vector.load %arg14[%c0_37, %c0_38] : memref<1x2xf32, #tpu.memory_space<vmem>>, vector<1x2xf32>
    %61 = vector.broadcast %60 : vector<1x2xf32> to vector<2x2xf32>
    %62 = arith.addf %59, %61 : vector<2x2xf32>
    %cst_39 = arith.constant dense<0xFF800000> : vector<2xf32>
    %63 = vector.multi_reduction <maximumf>, %62, %cst_39 [1] : vector<2x2xf32> to vector<2xf32>
    %64 = vector.shape_cast %63 : vector<2xf32> to vector<2x1xf32>
    %65 = vector.broadcast %64 : vector<2x1xf32> to vector<2x2xf32>
    %66 = arith.subf %62, %65 : vector<2x2xf32>
    %67 = math.exp %66 : vector<2x2xf32>
    %cst_40 = arith.constant dense<0.000000e+00> : vector<2xf32>
    %68 = vector.multi_reduction <add>, %67, %cst_40 [1] : vector<2x2xf32> to vector<2xf32>
    %69 = vector.shape_cast %68 : vector<2xf32> to vector<2x1xf32>
    %70 = math.log %69 : vector<2x1xf32>
    %71 = arith.addf %64, %70 : vector<2x1xf32>
    %72 = vector.broadcast %71 : vector<2x1xf32> to vector<2x2xf32>
    %73 = arith.subf %62, %72 : vector<2x2xf32>
    %c0_41 = arith.constant 0 : index
    %c0_42 = arith.constant 0 : index
    %74 = vector.load %arg15[%c0_41, %c0_42] : memref<2x2xf32, #tpu.memory_space<vmem>>, vector<2x2xf32>
    tpu.vector_store %arg15[%c0_41, %c0_42], %73 {strides = array<i32>} : memref<2x2xf32, #tpu.memory_space<vmem>>, vector<2x2xf32>,
    return
  }
}

</mosaic_0001>

<bundles_post_ra>
// kernel: gcn_forward.1
= control target key start
LH: loop header
LB: loop body
LE: loop exit
PB: predicated region body
PF: predicated region fallthrough
CT: control target
= control target key end

     0   :  { %s3052_s0 = inlined_call_operand.hbm [shape: bf16[512,512], index: 0, kind: input, shape index: {}]   ;;  %s3053_s1 = inlined_call_operand.vmem [shape: f32[1,512], index: 1, kind: input, shape index: {}]   ;;  %s3054_s2 = inlined_call_operand.vmem [shape: f32[8,1], index: 2, kind: input, shape index: {}]   ;;  %s3055_s3 = inlined_call_operand.vmem [shape: f32[8,1], index: 3, kind: input, shape index: {}]   ;;  %s3056_s4 = inlined_call_operand.vmem [shape: f32[8,1], index: 4, kind: input, shape index: {}]   ;;  %s3057_s5 = inlined_call_operand.vmem [shape: f32[2,8], index: 5, kind: input, shape index: {}]   ;;  %s3058_s6 = inlined_call_operand.<no memory space> [shape: f32[1,1], index: 6, kind: input, shape index: {}]   ;;  %s3059_s7 = inlined_call_operand.vmem [shape: bf16[256,51], index: 7, kind: input, shape index: {}]   ;;  %s3060_s8 = inlined_call_operand.vmem [shape: f32[1,51], index: 8, kind: input, shape index: {}]   ;;  %s3061_s9 = inlined_call_operand.vmem [shape: bf16[51,10], index: 9, kind: input, shape index: {}]   ;;  %s3062_s10 = inlined_call_operand.vmem [shape: f32[1,10], index: 10, kind: input, shape index: {}]   ;;  %s3063_s11 = inlined_call_operand.vmem [shape: bf16[10,2], index: 11, kind: input, shape index: {}]   ;;  %s3064_s12 = inlined_call_operand.vmem [shape: f32[1,2], index: 12, kind: input, shape index: {}]   ;;  %s3065_s13 = inlined_call_operand.vmem [shape: bf16[2,2], index: 13, kind: input, shape index: {}]   ;;  %s3066_s14 = inlined_call_operand.vmem [shape: f32[1,2], index: 14, kind: input, shape index: {}]   ;;  %s3067_s15 = inlined_call_operand.hbm [shape: f32[2,2], index: 15, kind: output, shape index: {}]  }
   0x1   :  { %v20_v0 = vstv %s3058_s6 }
   0x2   :  { %21 = vst [vmem:[#allocation2] sm:$0x1] %v20_v0 }
   0x3   :  { %22 = vsyncpa [#allocation4], 0 }
   0x4   :  { %23 = vsyncpa [#allocation5], 0  ;;  %s2319_s20 = smov [#allocation3]   ;;  %s2271_s24 = scalar_lea.hbm %s3052_s0, 16384 }
   0x5   :  { %s29_s21 = sshll.u32 %s2319_s20, 4  ;;  %p2272_p0 = scmp.ne.s32.totalorder %s3052_s0, %s2271_s24  ;;  %s30_s21 = int_to_ptr.vmem [resolvable:$true] %s29_s21 }
   0x6   :  { %p2275_p1 = scmp.lt.u32.totalorder %s2271_s24, %s3052_s0 }
   0x8   :  { %p2277_p2 = pnand %p2275_p1, %p2272_p0 }
   0xa   :  { %2280 = shalt.err (!%p2277_p2)
}
   0xb   :  { %s2281_s6 = scalar_lea.vmem %s30_s21, 16384  ;;  %p2286_p4 = scmp.lt.s32.totalorder %s30_s21, %s30_s21 }
   0xc   :  { %p2282_p3 = scmp.ne.s32.totalorder %s30_s21, %s2281_s6  ;;  %p2287_p5 = scmp.lt.s32.totalorder %s2281_s6, %s2281_s6 }
   0xe   :  { %p2288_p6 = por %p2287_p5, %p2286_p4 }
  0x10   :  { %p2289_p7 = pnand %p2288_p6, %p2282_p3 }
  0x12   :  { %2292 = shalt.err (!%p2289_p7)
}
  0x13   :  { %s2320_s29 = smov 256   ;;  %s2321_s30 = smov 16  }
  0x14   :  { %35 = dma.hbm_to_vmem [thread:$0]  %s3052_s0, 16384, %s30_s21, [#allocation4], %s2320_s29, %s2320_s29, %s2321_s30  }
  0x15   :  { %2315 = dma.done.wait [#allocation4], 16384  }
  0x16   :  { %2316 = vsyncadd [#allocation4], 4294950912  ;;  %v2422_v1 = vld [vmem:[#allocation3 + $0x4] ss:$16 sps:$4 sm:$0xff]   ;;  %v2038_v2 = vld [vmem:[#allocation3 + $0xc] ss:$16 sps:$4 sm:$0xff]   ;;  %v198_v38 = vlaneseq }
  0x17   :  { %862 = vmatprep.subr.bf16.mxu0 %v2422_v1  ;;  %v2425_v3 = vld [vmem:[#allocation3] ss:$16 sps:$4 sm:$0xff]   ;;  %v2041_v4 = vld [vmem:[#allocation3 + $0x8] ss:$16 sps:$4 sm:$0xff]   ;;  %944 = vmatprep.subr.bf16.mxu1 %v2038_v2  ;;  %v2427_v5 = vld [vmem:[#allocation3 + $0x24] ss:$16 sps:$4 sm:$0xff]  }
  0x18   :  { %863 = vmatpush1.bf16.msra.mxu0 %v2425_v3  ;;  %945 = vmatpush1.bf16.msra.mxu1 %v2041_v4  ;;  %v2044_v6 = vld [vmem:[#allocation3 + $0x2c] ss:$16 sps:$4 sm:$0xff]   ;;  %v2430_v7 = vld [vmem:[#allocation3 + $0x20] ss:$16 sps:$4 sm:$0xff]   ;;  %v2047_v8 = vld [vmem:[#allocation3 + $0x28] ss:$16 sps:$4 sm:$0xff]  }
  0x19   :  { %864 = vmatprep.subr.bf16.mxu0 %v2427_v5  ;;  %v3068_v9 = vmov 0   ;;  %946 = vmatprep.subr.bf16.mxu1 %v2044_v6  ;;  %v2434_v10 = vld [vmem:[#allocation3 + $0x44] ss:$16 sps:$4 sm:$0xff]   ;;  %v2050_v11 = vld [vmem:[#allocation3 + $0x4c] ss:$16 sps:$4 sm:$0xff]   ;;  %v2483_v42 = vshrl.u32 %v198_v38, 7 }
  0x1a   :  { %2034 = vset.pattern.permute.xlu0 %v3068_v9  ;;  %2035 = vset.pattern.permute.xlu1 %v3068_v9  ;;  %v2437_v12 = vld [vmem:[#allocation3 + $0x40] ss:$16 sps:$4 sm:$0xff]   ;;  %v2053_v13 = vld [vmem:[#allocation3 + $0x48] ss:$16 sps:$4 sm:$0xff]   ;;  %v2440_v14 = vld [vmem:[#allocation3 + $0x64] ss:$16 sps:$4 sm:$0xff]  }
  0x1b   :  { %v2056_v15 = vld [vmem:[#allocation3 + $0x6c] ss:$16 sps:$4 sm:$0xff]   ;;  %v2443_v16 = vld [vmem:[#allocation3 + $0x60] ss:$16 sps:$4 sm:$0xff]   ;;  %v2059_v17 = vld [vmem:[#allocation3 + $0x68] ss:$16 sps:$4 sm:$0xff]  }
  0x1c   :  { %865 = vmatpush1.bf16.msra.mxu0 %v2430_v7  ;;  %947 = vmatpush1.bf16.msra.mxu1 %v2047_v8  ;;  %v2446_v18 = vld [vmem:[#allocation3 + $0x84] ss:$16 sps:$4 sm:$0xff]   ;;  %v2062_v19 = vld [vmem:[#allocation3 + $0x8c] ss:$16 sps:$4 sm:$0xff]   ;;  %v2449_v20 = vld [vmem:[#allocation3 + $0x80] ss:$16 sps:$4 sm:$0xff]  }
  0x1d   :  { %866 = vmatprep.subr.bf16.mxu0 %v2434_v10  ;;  %948 = vmatprep.subr.bf16.mxu1 %v2050_v11  ;;  %v2065_v21 = vld [vmem:[#allocation3 + $0x88] ss:$16 sps:$4 sm:$0xff]   ;;  %v2452_v22 = vld [vmem:[#allocation3 + $0xa4] ss:$16 sps:$4 sm:$0xff]   ;;  %v2068_v23 = vld [vmem:[#allocation3 + $0xac] ss:$16 sps:$4 sm:$0xff]  }
  0x1e   :  { %v2455_v24 = vld [vmem:[#allocation3 + $0xa0] ss:$16 sps:$4 sm:$0xff]   ;;  %v2071_v25 = vld [vmem:[#allocation3 + $0xa8] ss:$16 sps:$4 sm:$0xff]   ;;  %v2458_v26 = vld [vmem:[#allocation3 + $0xc4] ss:$16 sps:$4 sm:$0xff]  }
  0x1f   :  { %v2074_v27 = vld [vmem:[#allocation3 + $0xcc] ss:$16 sps:$4 sm:$0xff]   ;;  %v2461_v28 = vld [vmem:[#allocation3 + $0xc0] ss:$16 sps:$4 sm:$0xff]   ;;  %v2077_v29 = vld [vmem:[#allocation3 + $0xc8] ss:$16 sps:$4 sm:$0xff]  }
  0x20   :  { %867 = vmatpush1.bf16.msra.mxu0 %v2437_v12  ;;  %949 = vmatpush1.bf16.msra.mxu1 %v2053_v13  ;;  %v2464_v30 = vld [vmem:[#allocation3 + $0xe4] ss:$16 sps:$4 sm:$0xff]   ;;  %v2080_v31 = vld [vmem:[#allocation3 + $0xec] ss:$16 sps:$4 sm:$0xff]   ;;  %v2467_v32 = vld [vmem:[#allocation3 + $0xe0] ss:$16 sps:$4 sm:$0xff]  }
  0x21   :  { %868 = vmatprep.subr.bf16.mxu0 %v2440_v14  ;;  %950 = vmatprep.subr.bf16.mxu1 %v2056_v15  ;;  %v2083_v33 = vld [vmem:[#allocation3 + $0xe8] ss:$16 sps:$4 sm:$0xff]   ;;  %v2470_v34 = vld [vmem:[#allocation3 + $0x104] ss:$16 sps:$4 sm:$0xff]   ;;  %v2086_v35 = vld [vmem:[#allocation3 + $0x10c] ss:$16 sps:$4 sm:$0xff]  }
  0x22   :  { %v2473_v36 = vld [vmem:[#allocation3 + $0x100] ss:$16 sps:$4 sm:$0xff]   ;;  %v2089_v37 = vld [vmem:[#allocation3 + $0x108] ss:$16 sps:$4 sm:$0xff]   ;;  %v2476_v39 = vld [vmem:[#allocation3 + $0x124] ss:$16 sps:$4 sm:$0xff]  }
  0x23   :  { %3145 = vst [vmem:[#allocation9_spill] sm:$0xff] %v2476_v39  ;;  %v2479_v40 = vld [vmem:[#allocation3 + $0x12c] ss:$16 sps:$4 sm:$0xff]   ;;  %v2481_v41 = vld [vmem:[#allocation3 + $0x120] ss:$16 sps:$4 sm:$0xff]   ;;  %v204_v48 = vsub.s32 1, %v2483_v42 }
  0x24   :  { %869 = vmatpush1.bf16.msra.mxu0 %v2443_v16  ;;  %951 = vmatpush1.bf16.msra.mxu1 %v2059_v17  ;;  %3146 = vst [vmem:[#allocation10_spill] sm:$0xff] %v2479_v40  ;;  %3147 = vst [vmem:[#allocation11_spill] sm:$0xff] %v2481_v41  ;;  %v2486_v43 = vld [vmem:[#allocation3 + $0x128] ss:$16 sps:$4 sm:$0xff]   ;;  %v2488_v44 = vld [vmem:[#allocation3 + $0x144] ss:$16 sps:$4 sm:$0xff]  }
  0x25   :  { %870 = vmatprep.subr.bf16.mxu0 %v2446_v18  ;;  %952 = vmatprep.subr.bf16.mxu1 %v2062_v19  ;;  %3148 = vst [vmem:[#allocation12_spill] sm:$0xff] %v2486_v43  ;;  %3149 = vst [vmem:[#allocation13_spill] sm:$0xff] %v2488_v44  ;;  %v2492_v45 = vld [vmem:[#allocation3 + $0x14c] ss:$16 sps:$4 sm:$0xff]   ;;  %v2494_v46 = vld [vmem:[#allocation3 + $0x140] ss:$16 sps:$4 sm:$0xff]  }
  0x26   :  { %3150 = vst [vmem:[#allocation14_spill] sm:$0xff] %v2492_v45  ;;  %3151 = vst [vmem:[#allocation15_spill] sm:$0xff] %v2494_v46  ;;  %v2496_v47 = vld [vmem:[#allocation3 + $0x148] ss:$16 sps:$4 sm:$0xff]   ;;  %v208_v49 = vsub.s32 2, %v2483_v42  ;;  %v2556_v11 = vsub.s32 0, %v2483_v42 }
  0x27   :  { %3152 = vst [vmem:[#allocation16_spill] sm:$0xff] %v2496_v47  ;;  %v2502_v50 = vld [vmem:[#allocation3 + $0x164] ss:$16 sps:$4 sm:$0xff]   ;;  %v2506_v51 = vld [vmem:[#allocation3 + $0x16c] ss:$16 sps:$4 sm:$0xff]   ;;  %v212_v19 = vsub.s32 3, %v2483_v42 }
  0x28   :  { %871 = vmatpush1.bf16.msra.mxu0 %v2449_v20  ;;  %953 = vmatpush1.bf16.msra.mxu1 %v2065_v21  ;;  %3153 = vst [vmem:[#allocation17_spill] sm:$0xff] %v2502_v50  ;;  %3154 = vst [vmem:[#allocation18_spill] sm:$0xff] %v2506_v51  ;;  %v196_v52 = vld [vmem:[%s3053_s1] sm:$0xf]  ;;  %v2519_v56 = vld [vmem:[#allocation3 + $0x168] ss:$16 sps:$4 sm:$0xff]  }
  0x29   :  { %872 = vmatprep.subr.bf16.mxu0 %v2452_v22  ;;  %954 = vmatprep.subr.bf16.mxu1 %v2068_v23  ;;  %v2511_v53 = vld [vmem:[#allocation3 + $0x160] ss:$16 sps:$4 sm:$0xff]   ;;  %v2513_v54 = vrot.slane %v196_v52, %v204_v48  ;;  %v2515_v55 = vrot.slane %v196_v52, %v208_v49  ;;  %3156 = vst [vmem:[#allocation20_spill] sm:$0xff] %v2519_v56  ;;  %v2523_v57 = vld [vmem:[#allocation3 + $0x184] ss:$16 sps:$4 sm:$0xff]   ;;  %3168 = vst [vmem:[#allocation32_spill] sm:$0xff] %v2556_v11 }
  0x2a   :  { %3155 = vst [vmem:[#allocation19_spill] sm:$0xff] %v2511_v53  ;;  %3157 = vst [vmem:[#allocation21_spill] sm:$0xff] %v2523_v57  ;;  %v2525_v58 = vld [vmem:[#allocation3 + $0x18c] ss:$16 sps:$4 sm:$0xff]   ;;  %v2529_v60 = vld [vmem:[#allocation3 + $0x180] ss:$16 sps:$4 sm:$0xff]   ;;  %v2572_v23 = vrot.slane %v196_v52, %v2556_v11 }
  0x2b   :  { %3158 = vst [vmem:[#allocation22_spill] sm:$0xff] %v2525_v58  ;;  %v219_v59 = vpack.c.bf16 %v2513_v54, %v2513_v54  ;;  %3159 = vst [vmem:[#allocation23_spill] sm:$0xff] %v2529_v60  ;;  %v2533_v61 = vld [vmem:[#allocation3 + $0x188] ss:$16 sps:$4 sm:$0xff]   ;;  %v2537_v62 = vld [vmem:[#allocation3 + $0x1a4] ss:$16 sps:$4 sm:$0xff]  }
  0x2c   :  { %873 = vmatpush1.bf16.msra.mxu0 %v2455_v24  ;;  %955 = vmatpush1.bf16.msra.mxu1 %v2071_v25  ;;  %3160 = vst [vmem:[#allocation24_spill] sm:$0xff] %v2533_v61  ;;  %3161 = vst [vmem:[#allocation25_spill] sm:$0xff] %v2537_v62  ;;  %v2539_v63 = vld [vmem:[#allocation3 + $0x1ac] ss:$16 sps:$4 sm:$0xff]   ;;  %v2541_v0 = vld [vmem:[#allocation3 + $0x1a0] ss:$16 sps:$4 sm:$0xff]  }
  0x2d   :  { %874 = vmatprep.subr.bf16.mxu0 %v2458_v26  ;;  %956 = vmatprep.subr.bf16.mxu1 %v2074_v27  ;;  %3162 = vst [vmem:[#allocation26_spill] sm:$0xff] %v2539_v63  ;;  %3163 = vst [vmem:[#allocation27_spill] sm:$0xff] %v2541_v0  ;;  %v2545_v2 = vld [vmem:[#allocation3 + $0x1a8] ss:$16 sps:$4 sm:$0xff]   ;;  %v2549_v4 = vld [vmem:[#allocation3 + $0x1c4] ss:$16 sps:$4 sm:$0xff]  }
  0x2e   :  { %894 = vmatprep.mubr.bf16.mxu0 %v219_v59  ;;  %976 = vmatprep.mubr.bf16.mxu1 %v219_v59  ;;  %3164 = vst [vmem:[#allocation28_spill] sm:$0xff] %v2545_v2  ;;  %3165 = vst [vmem:[#allocation29_spill] sm:$0xff] %v2549_v4  ;;  %v2551_v6 = vld [vmem:[#allocation3 + $0x1cc] ss:$16 sps:$4 sm:$0xff]   ;;  %v2553_v8 = vld [vmem:[#allocation3 + $0x1c0] ss:$16 sps:$4 sm:$0xff]  }
  0x2f   :  { %3166 = vst [vmem:[#allocation30_spill] sm:$0xff] %v2551_v6  ;;  %3167 = vst [vmem:[#allocation31_spill] sm:$0xff] %v2553_v8  ;;  %v2560_v13 = vld [vmem:[#allocation3 + $0x1c8] ss:$16 sps:$4 sm:$0xff]   ;;  %v2564_v15 = vld [vmem:[#allocation3 + $0x1e4] ss:$16 sps:$4 sm:$0xff]  }
  0x30   :  { %875 = vmatpush1.bf16.msra.mxu0 %v2461_v28  ;;  %957 = vmatpush1.bf16.msra.mxu1 %v2077_v29  ;;  %3169 = vst [vmem:[#allocation33_spill] sm:$0xff] %v2560_v13  ;;  %3170 = vst [vmem:[#allocation34_spill] sm:$0xff] %v2564_v15  ;;  %v2566_v17 = vld [vmem:[#allocation3 + $0x1ec] ss:$16 sps:$4 sm:$0xff]   ;;  %v2569_v21 = vld [vmem:[#allocation3 + $0x1e0] ss:$16 sps:$4 sm:$0xff]  }
  0x31   :  { %876 = vmatprep.subr.bf16.mxu0 %v2464_v30  ;;  %958 = vmatprep.subr.bf16.mxu1 %v2080_v31  ;;  %3171 = vst [vmem:[#allocation35_spill] sm:$0xff] %v2566_v17  ;;  %3172 = vst [vmem:[#allocation36_spill] sm:$0xff] %v2569_v21  ;;  %v2576_v25 = vld [vmem:[#allocation3 + $0x1e8] ss:$16 sps:$4 sm:$0xff]   ;;  %v2580_v27 = vld [vmem:[#allocation3 + $0x204] ss:$16 sps:$4 sm:$0xff]   ;;  %v2584_v31 = vrot.slane %v196_v52, %v212_v19 }
  0x32   :  { %3173 = vst [vmem:[#allocation37_spill] sm:$0xff] %v2576_v25  ;;  %v2582_v29 = vld [vmem:[#allocation3 + $0x20c] ss:$16 sps:$4 sm:$0xff]   ;;  %v2596_v38 = vld [vmem:[#allocation3 + $0x224] ss:$16 sps:$4 sm:$0xff]   ;;  %vm1090_vm0 = vcmask 1043456  }
  0x33   :  { %3174 = vst [vmem:[#allocation38_spill] sm:$0xff] %v2582_v29  ;;  %v2598_v42 = vld [vmem:[#allocation3 + $0x22c] ss:$16 sps:$4 sm:$0xff]   ;;  %v221_v48 = vpack.c.bf16 %v2584_v31, %v2584_v31  ;;  %v2602_v49 = vld [vmem:[#allocation3 + $0x220] ss:$16 sps:$4 sm:$0xff]   ;;  %vm1086_vm1 = vcmask 64512  }
  0x34   :  { %877 = vmatpush1.bf16.msra.mxu0 %v2467_v32  ;;  %959 = vmatpush1.bf16.msra.mxu1 %v2083_v33  ;;  %v2586_v33 = vld [vmem:[#allocation3 + $0x200] ss:$16 sps:$4 sm:$0xff]   ;;  %3176 = vst [vmem:[#allocation40_spill] sm:$0xff] %v2598_v42  ;;  %v2606_v52 = vld [vmem:[#allocation3 + $0x228] ss:$16 sps:$4 sm:$0xff]   ;;  %vm1385_vm2 = vcmask 1040384  }
  0x35   :  { %878 = vmatprep.subr.bf16.mxu0 %v2470_v34  ;;  %960 = vmatprep.subr.bf16.mxu1 %v2086_v35  ;;  %v218_v35 = vpack.c.bf16 %v2572_v23, %v2572_v23  ;;  %3177 = vst [vmem:[#allocation41_spill] sm:$0xff] %v2606_v52  ;;  %v2610_v59 = vld [vmem:[#allocation3 + $0x244] ss:$16 sps:$4 sm:$0xff]   ;;  %v2612_v19 = vld [vmem:[#allocation3 + $0x24c] ss:$16 sps:$4 sm:$0xff]   ;;  %vm1606_vm3 = vcmask 1041408  }
  0x36   :  { %3178 = vst [vmem:[#allocation42_spill] sm:$0xff] %v2612_v19  ;;  %v2614_v9 = vld [vmem:[#allocation3 + $0x240] ss:$16 sps:$4 sm:$0xff]   ;;  %vm2325_vm4 = vmmov 0   ;;  %vm1602_vm5 = vcmask 416768   ;;  %vm1672_vm6 = vcmask 1044480  }
  0x37   :  { %vm1668_vm7 = vcmask 80896   ;;  %vm1726_vm8 = vcmask 15360   ;;  %vm1773_vm9 = vcmask 9216  }
  0x38   :  { %879 = vmatpush1.bf16.msra.mxu0 %v2473_v36  ;;  %961 = vmatpush1.bf16.msra.mxu1 %v2089_v37  ;;  %v2592_v37 = vld [vmem:[#allocation3 + $0x208] ss:$16 sps:$4 sm:$0xff]  }
  0x39   :  { %880 = vmatprep.subr.bf16.mxu0 %v2476_v39  ;;  %962 = vmatprep.subr.bf16.mxu1 %v2479_v40  ;;  %3175 = vst [vmem:[#allocation39_spill] sm:$0xff] %v2592_v37  ;;  %v1026_v40 = vld [vmem:[%s3054_s2] sm:$0xff] }
  0x3a   :  { %1029 = vperm.xlu0 %2034, %v1026_v40   ;;  %v2683_v40 = vld [vmem:[#allocation3 + $0x2e0] ss:$16 sps:$4 sm:$0xff]  }
  0x3c   :  { %881 = vmatpush1.bf16.msra.mxu0 %v2481_v41  ;;  %963 = vmatpush1.bf16.msra.mxu1 %v2486_v43  ;;  %v2660_v43 = vld [vmem:[#allocation3 + $0x2cc] ss:$16 sps:$4 sm:$0xff]  }
  0x3d   :  { %882 = vmatprep.subr.bf16.mxu0 %v2488_v44  ;;  %964 = vmatprep.subr.bf16.mxu1 %v2492_v45  ;;  %v2658_v45 = vld [vmem:[#allocation3 + $0x2c4] ss:$16 sps:$4 sm:$0xff]   ;;  %3186 = vst [vmem:[#allocation50_spill] sm:$0xff] %v2660_v43 }
  0x40   :  { %883 = vmatpush1.bf16.msra.mxu0 %v2494_v46  ;;  %965 = vmatpush1.bf16.msra.mxu1 %v2496_v47  ;;  %v2654_v47 = vld [vmem:[#allocation3 + $0x2a8] ss:$16 sps:$4 sm:$0xff]  }
  0x41   :  { %884 = vmatprep.subr.bf16.mxu0 %v2502_v50  ;;  %966 = vmatprep.subr.bf16.mxu1 %v2506_v51  ;;  %v2650_v51 = vld [vmem:[#allocation3 + $0x2a0] ss:$16 sps:$4 sm:$0xff]   ;;  %3185 = vst [vmem:[#allocation49_spill] sm:$0xff] %v2654_v47 }
  0x44   :  { %885 = vmatpush1.bf16.msra.mxu0 %v2511_v53  ;;  %967 = vmatpush1.bf16.msra.mxu1 %v2519_v56  ;;  %v2648_v56 = vld [vmem:[#allocation3 + $0x2ac] ss:$16 sps:$4 sm:$0xff]  }
  0x45   :  { %886 = vmatprep.subr.bf16.mxu0 %v2523_v57  ;;  %968 = vmatprep.subr.bf16.mxu1 %v2525_v58  ;;  %v2646_v58 = vld [vmem:[#allocation3 + $0x2a4] ss:$16 sps:$4 sm:$0xff]   ;;  %3184 = vst [vmem:[#allocation48_spill] sm:$0xff] %v2648_v56 }
  0x48   :  { %887 = vmatpush1.bf16.msra.mxu0 %v2529_v60  ;;  %969 = vmatpush1.bf16.msra.mxu1 %v2533_v61  ;;  %v2642_v61 = vld [vmem:[#allocation3 + $0x288] ss:$16 sps:$4 sm:$0xff]   ;;  %v2765_v60 = vld [vmem:[#allocation3 + $0x3cc] ss:$16 sps:$4 sm:$0xff]  }
  0x49   :  { %888 = vmatprep.subr.bf16.mxu0 %v2537_v62  ;;  %970 = vmatprep.subr.bf16.mxu1 %v2539_v63  ;;  %v2638_v63 = vld [vmem:[#allocation3 + $0x280] ss:$16 sps:$4 sm:$0xff]   ;;  %3183 = vst [vmem:[#allocation47_spill] sm:$0xff] %v2642_v61  ;;  %v2759_v62 = vld [vmem:[#allocation3 + $0x3a8] ss:$16 sps:$4 sm:$0xff]   ;;  %3213 = vst [vmem:[#allocation77_spill] sm:$0xff] %v2765_v60 }
  0x4a   :  { %3211 = vst [vmem:[#allocation75_spill] sm:$0xff] %v2759_v62 }
  0x4c   :  { %889 = vmatpush1.bf16.msra.mxu0 %v2541_v0  ;;  %971 = vmatpush1.bf16.msra.mxu1 %v2545_v2  ;;  %v2636_v2 = vld [vmem:[#allocation3 + $0x28c] ss:$16 sps:$4 sm:$0xff]  }
  0x4d   :  { %890 = vmatprep.subr.bf16.mxu0 %v2549_v4  ;;  %972 = vmatprep.subr.bf16.mxu1 %v2551_v6  ;;  %v2634_v6 = vld [vmem:[#allocation3 + $0x284] ss:$16 sps:$4 sm:$0xff]   ;;  %3182 = vst [vmem:[#allocation46_spill] sm:$0xff] %v2636_v2  ;;  %v2747_v4 = vld [vmem:[#allocation3 + $0x388] ss:$16 sps:$4 sm:$0xff]  }
  0x4e   :  { %3207 = vst [vmem:[#allocation71_spill] sm:$0xff] %v2747_v4  ;;  %v2753_v0 = vld [vmem:[#allocation3 + $0x3ac] ss:$16 sps:$4 sm:$0xff]  }
  0x4f   :  { %3209 = vst [vmem:[#allocation73_spill] sm:$0xff] %v2753_v0 }
  0x50   :  { %891 = vmatpush1.bf16.msra.mxu0 %v2553_v8  ;;  %973 = vmatpush1.bf16.msra.mxu1 %v2560_v13  ;;  %v2626_v13 = vld [vmem:[#allocation3 + $0x260] ss:$16 sps:$4 sm:$0xff]   ;;  %v2741_v8 = vld [vmem:[#allocation3 + $0x38c] ss:$16 sps:$4 sm:$0xff]  }
  0x51   :  { %892 = vmatprep.subr.bf16.mxu0 %v2564_v15  ;;  %974 = vmatprep.subr.bf16.mxu1 %v2566_v17  ;;  %v2624_v17 = vld [vmem:[#allocation3 + $0x26c] ss:$16 sps:$4 sm:$0xff]   ;;  %v2735_v15 = vld [vmem:[#allocation3 + $0x368] ss:$16 sps:$4 sm:$0xff]   ;;  %3205 = vst [vmem:[#allocation69_spill] sm:$0xff] %v2741_v8 }
  0x52   :  { %3180 = vst [vmem:[#allocation44_spill] sm:$0xff] %v2624_v17  ;;  %3203 = vst [vmem:[#allocation67_spill] sm:$0xff] %v2735_v15 }
  0x54   :  { %893 = vmatpush1.bf16.msra.mxu0 %v2569_v21  ;;  %975 = vmatpush1.bf16.msra.mxu1 %v2576_v25  ;;  %v2622_v25 = vld [vmem:[#allocation3 + $0x264] ss:$16 sps:$4 sm:$0xff]   ;;  %v2729_v21 = vld [vmem:[#allocation3 + $0x36c] ss:$16 sps:$4 sm:$0xff]  }
  0x55   :  { %903 = vmatprep.subr.bf16.mxu0 %v2580_v27  ;;  %985 = vmatprep.subr.bf16.mxu1 %v2582_v29  ;;  %v2717_v29 = vld [vmem:[#allocation3 + $0x34c] ss:$16 sps:$4 sm:$0xff]   ;;  %3201 = vst [vmem:[#allocation65_spill] sm:$0xff] %v2729_v21 }
  0x56   :  { %3197 = vst [vmem:[#allocation61_spill] sm:$0xff] %v2717_v29 }
  0x57   :  { %895 = vmatmul.mubr.bf16.vlgmr.msra.gmra.mrb[0].mxu0 %v218_v35  ;;  %977 = vmatmul.mubr.bf16.vlgmr.msra.gmra.mrb[0].mxu1 %v218_v35  ;;  %v2618_v35 = vld [vmem:[#allocation3 + $0x248] ss:$16 sps:$4 sm:$0xff]  }
  0x58   :  { %904 = vmatpush1.bf16.msra.mxu0 %v2586_v33  ;;  %986 = vmatpush1.bf16.msra.mxu1 %v2592_v37  ;;  %3179 = vst [vmem:[#allocation43_spill] sm:$0xff] %v2618_v35  ;;  %v2689_v37 = vld [vmem:[#allocation3 + $0x30c] ss:$16 sps:$4 sm:$0xff]  }
  0x59   :  { %905 = vmatprep.subr.bf16.mxu0 %v2596_v38  ;;  %987 = vmatprep.subr.bf16.mxu1 %v2598_v42  ;;  %v2687_v42 = vld [vmem:[#allocation3 + $0x304] ss:$16 sps:$4 sm:$0xff]   ;;  %3190 = vst [vmem:[#allocation54_spill] sm:$0xff] %v2689_v37 }
  0x5a   :  { %935 = vmatprep.mubr.bf16.mxu0 %v221_v48  ;;  %1017 = vmatprep.mubr.bf16.mxu1 %v221_v48  ;;  %v2630_v48 = vld [vmem:[#allocation3 + $0x268] ss:$16 sps:$4 sm:$0xff]  }
  0x5b   :  { %3181 = vst [vmem:[#allocation45_spill] sm:$0xff] %v2630_v48 }
  0x5c   :  { %906 = vmatpush1.bf16.msra.mxu0 %v2602_v49  ;;  %988 = vmatpush1.bf16.msra.mxu1 %v2606_v52  ;;  %v2685_v52 = vld [vmem:[#allocation3 + $0x2e8] ss:$16 sps:$4 sm:$0xff]  }
  0x5d   :  { %907 = vmatprep.subr.bf16.mxu0 %v2610_v59  ;;  %989 = vmatprep.subr.bf16.mxu1 %v2612_v19  ;;  %v2677_v19 = vld [vmem:[#allocation3 + $0x2ec] ss:$16 sps:$4 sm:$0xff]   ;;  %3189 = vst [vmem:[#allocation53_spill] sm:$0xff] %v2685_v52 }
  0x5e   :  { %3188 = vst [vmem:[#allocation52_spill] sm:$0xff] %v2677_v19 }
  0x60   :  { %908 = vmatpush1.bf16.msra.mxu0 %v2614_v9  ;;  %990 = vmatpush1.bf16.msra.mxu1 %v2618_v35  ;;  %v2675_v35 = vld [vmem:[#allocation3 + $0x2e4] ss:$16 sps:$4 sm:$0xff]  }
  0x61   :  { %909 = vmatprep.subr.bf16.mxu0 %v2622_v25  ;;  %991 = vmatprep.subr.bf16.mxu1 %v2624_v17  ;;  %v1365_v17 = vld [vmem:[#allocation2] sm:$0x1] }
  0x64   :  { %910 = vmatpush1.bf16.msra.mxu0 %v2626_v13  ;;  %992 = vmatpush1.bf16.msra.mxu1 %v2630_v48  ;;  %v2667_v48 = vld [vmem:[#allocation3 + $0x2c8] ss:$16 sps:$4 sm:$0xff]  }
  0x65   :  { %911 = vmatprep.subr.bf16.mxu0 %v2634_v6  ;;  %993 = vmatprep.subr.bf16.mxu1 %v2636_v2  ;;  %v2665_v2 = vld [vmem:[#allocation3 + $0x2c0] ss:$16 sps:$4 sm:$0xff]   ;;  %3187 = vst [vmem:[#allocation51_spill] sm:$0xff] %v2667_v48 }
  0x68   :  { %912 = vmatpush1.bf16.msra.mxu0 %v2638_v63  ;;  %994 = vmatpush1.bf16.msra.mxu1 %v2642_v61  ;;  %v1052_v61 = vld [vmem:[%s3055_s3] sm:$0xff] }
  0x69   :  { %913 = vmatprep.subr.bf16.mxu0 %v2646_v58  ;;  %995 = vmatprep.subr.bf16.mxu1 %v2648_v56  ;;  %v1066_v56 = vld [vmem:[%s3056_s4] sm:$0xff] }
  0x6a   :  { %1069 = vperm.xlu1 %2035, %v1066_v56   ;;  %1055 = vperm.xlu0 %2034, %v1052_v61   ;;  %v2695_v56 = vld [vmem:[#allocation3 + $0x300] ss:$16 sps:$4 sm:$0xff]   ;;  %v2701_v61 = vld [vmem:[#allocation3 + $0x32c] ss:$16 sps:$4 sm:$0xff]  }
  0x6b   :  { %3193 = vst [vmem:[#allocation57_spill] sm:$0xff] %v2701_v61 }
  0x6c   :  { %914 = vmatpush1.bf16.msra.mxu0 %v2650_v51  ;;  %996 = vmatpush1.bf16.msra.mxu1 %v2654_v47  ;;  %v2699_v47 = vld [vmem:[#allocation3 + $0x324] ss:$16 sps:$4 sm:$0xff]  }
  0x6d   :  { %915 = vmatprep.subr.bf16.mxu0 %v2658_v45  ;;  %997 = vmatprep.subr.bf16.mxu1 %v2660_v43  ;;  %v2697_v43 = vld [vmem:[#allocation3 + $0x308] ss:$16 sps:$4 sm:$0xff]   ;;  %3192 = vst [vmem:[#allocation56_spill] sm:$0xff] %v2699_v47 }
  0x6e   :  { %1368 = vperm.xlu1 %2035, %v1365_v17   ;;  %3191 = vst [vmem:[#allocation55_spill] sm:$0xff] %v2697_v43  ;;  %v2707_v17 = vld [vmem:[#allocation3 + $0x320] ss:$16 sps:$4 sm:$0xff]  }
  0x6f   :  { %3194 = vst [vmem:[#allocation58_spill] sm:$0xff] %v2707_v17 }
  0x70   :  { %916 = vmatpush1.bf16.msra.mxu0 %v2665_v2  ;;  %998 = vmatpush1.bf16.msra.mxu1 %v2667_v48  ;;  %v2715_v48 = vld [vmem:[#allocation3 + $0x344] ss:$16 sps:$4 sm:$0xff]  }
  0x71   :  { %917 = vmatprep.subr.bf16.mxu0 %v2675_v35  ;;  %999 = vmatprep.subr.bf16.mxu1 %v2677_v19  ;;  %v2711_v19 = vld [vmem:[#allocation3 + $0x328] ss:$16 sps:$4 sm:$0xff]   ;;  %3196 = vst [vmem:[#allocation60_spill] sm:$0xff] %v2715_v48 }
  0x72   :  { %3195 = vst [vmem:[#allocation59_spill] sm:$0xff] %v2711_v19 }
  0x74   :  { %918 = vmatpush1.bf16.msra.mxu0 %v2683_v40  ;;  %1000 = vmatpush1.bf16.msra.mxu1 %v2685_v52  ;;  %v2723_v52 = vld [vmem:[#allocation3 + $0x348] ss:$16 sps:$4 sm:$0xff]  }
  0x75   :  { %919 = vmatprep.subr.bf16.mxu0 %v2687_v42  ;;  %1001 = vmatprep.subr.bf16.mxu1 %v2689_v37  ;;  %v2721_v37 = vld [vmem:[#allocation3 + $0x340] ss:$16 sps:$4 sm:$0xff]   ;;  %3199 = vst [vmem:[#allocation63_spill] sm:$0xff] %v2723_v52 }
  0x76   :  { %3198 = vst [vmem:[#allocation62_spill] sm:$0xff] %v2721_v37 }
  0x78   :  { %920 = vmatpush1.bf16.msra.mxu0 %v2695_v56  ;;  %1002 = vmatpush1.bf16.msra.mxu1 %v2697_v43  ;;  %v2727_v43 = vld [vmem:[#allocation3 + $0x364] ss:$16 sps:$4 sm:$0xff]  }
  0x79   :  { %921 = vmatprep.subr.bf16.mxu0 %v2699_v47  ;;  %1003 = vmatprep.subr.bf16.mxu1 %v2701_v61  ;;  %3200 = vst [vmem:[#allocation64_spill] sm:$0xff] %v2727_v43  ;;  %v2733_v61 = vld [vmem:[#allocation3 + $0x360] ss:$16 sps:$4 sm:$0xff]  }
  0x7a   :  { %3202 = vst [vmem:[#allocation66_spill] sm:$0xff] %v2733_v61 }
  0x7c   :  { %922 = vmatpush1.bf16.msra.mxu0 %v2707_v17  ;;  %1004 = vmatpush1.bf16.msra.mxu1 %v2711_v19  ;;  %v2739_v19 = vld [vmem:[#allocation3 + $0x384] ss:$16 sps:$4 sm:$0xff]  }
  0x7d   :  { %923 = vmatprep.subr.bf16.mxu0 %v2715_v48  ;;  %1005 = vmatprep.subr.bf16.mxu1 %v2717_v29  ;;  %3204 = vst [vmem:[#allocation68_spill] sm:$0xff] %v2739_v19  ;;  %v2745_v29 = vld [vmem:[#allocation3 + $0x380] ss:$16 sps:$4 sm:$0xff]  }
  0x7e   :  { %3206 = vst [vmem:[#allocation70_spill] sm:$0xff] %v2745_v29 }
  0x80   :  { %924 = vmatpush1.bf16.msra.mxu0 %v2721_v37  ;;  %1006 = vmatpush1.bf16.msra.mxu1 %v2723_v52  ;;  %v2751_v52 = vld [vmem:[#allocation3 + $0x3a4] ss:$16 sps:$4 sm:$0xff]  }
  0x81   :  { %925 = vmatprep.subr.bf16.mxu0 %v2727_v43  ;;  %1007 = vmatprep.subr.bf16.mxu1 %v2729_v21  ;;  %3208 = vst [vmem:[#allocation72_spill] sm:$0xff] %v2751_v52  ;;  %v2757_v21 = vld [vmem:[#allocation3 + $0x3a0] ss:$16 sps:$4 sm:$0xff]  }
  0x82   :  { %3210 = vst [vmem:[#allocation74_spill] sm:$0xff] %v2757_v21 }
  0x84   :  { %926 = vmatpush1.bf16.msra.mxu0 %v2733_v61  ;;  %1008 = vmatpush1.bf16.msra.mxu1 %v2735_v15  ;;  %v2763_v15 = vld [vmem:[#allocation3 + $0x3c4] ss:$16 sps:$4 sm:$0xff]  }
  0x85   :  { %927 = vmatprep.subr.bf16.mxu0 %v2739_v19  ;;  %1009 = vmatprep.subr.bf16.mxu1 %v2741_v8  ;;  %3212 = vst [vmem:[#allocation76_spill] sm:$0xff] %v2763_v15  ;;  %v2769_v8 = vld [vmem:[#allocation3 + $0x3c0] ss:$16 sps:$4 sm:$0xff]  }
  0x86   :  { %3214 = vst [vmem:[#allocation78_spill] sm:$0xff] %v2769_v8 }
  0x88   :  { %928 = vmatpush1.bf16.msra.mxu0 %v2745_v29  ;;  %1010 = vmatpush1.bf16.msra.mxu1 %v2747_v4  ;;  %v2771_v29 = vld [vmem:[#allocation3 + $0x3c8] ss:$16 sps:$4 sm:$0xff]   ;;  %v2775_v4 = vld [vmem:[#allocation3 + $0x3e4] ss:$16 sps:$4 sm:$0xff]  }
  0x89   :  { %929 = vmatprep.subr.bf16.mxu0 %v2751_v52  ;;  %1011 = vmatprep.subr.bf16.mxu1 %v2753_v0  ;;  %3215 = vst [vmem:[#allocation79_spill] sm:$0xff] %v2771_v29  ;;  %3216 = vst [vmem:[#allocation80_spill] sm:$0xff] %v2775_v4  ;;  %v2777_v52 = vld [vmem:[#allocation3 + $0x3ec] ss:$16 sps:$4 sm:$0xff]   ;;  %v2781_v0 = vld [vmem:[#allocation3 + $0x3e0] ss:$16 sps:$4 sm:$0xff]  }
  0x8a   :  { %3217 = vst [vmem:[#allocation81_spill] sm:$0xff] %v2777_v52  ;;  %3218 = vst [vmem:[#allocation82_spill] sm:$0xff] %v2781_v0 }
  0x8c   :  { %930 = vmatpush1.bf16.msra.mxu0 %v2757_v21  ;;  %1012 = vmatpush1.bf16.msra.mxu1 %v2759_v62  ;;  %v2783_v21 = vld [vmem:[#allocation3 + $0x3e8] ss:$16 sps:$4 sm:$0xff]   ;;  %v220_v62 = vpack.c.bf16 %v2515_v55, %v2515_v55 }
  0x8d   :  { %931 = vmatprep.subr.bf16.mxu0 %v2763_v15  ;;  %1013 = vmatprep.subr.bf16.mxu1 %v2765_v60  ;;  %3219 = vst [vmem:[#allocation83_spill] sm:$0xff] %v2783_v21  ;;  %v3220_v60 = vmov 0  }
  0x90   :  { %932 = vmatpush1.bf16.msra.mxu0 %v2769_v8  ;;  %1014 = vmatpush1.bf16.msra.mxu1 %v2771_v29 }
  0x91   :  { %933 = vmatprep.subr.bf16.mxu0 %v2775_v4  ;;  %1015 = vmatprep.subr.bf16.mxu1 %v2777_v52 }
  0x94   :  { %934 = vmatpush1.bf16.msra.mxu0 %v2781_v0  ;;  %1016 = vmatpush1.bf16.msra.mxu1 %v2783_v21 }
  0x97   :  { %936 = vmatmul.mubr.bf16.vlgmr.msra.gmra.mrb[0].mxu0 %v220_v62  ;;  %1018 = vmatmul.mubr.bf16.vlgmr.msra.gmra.mrb[0].mxu1 %v220_v62 }
  0x98   :  { %1135 = vmatprep.mubr.bf16.mxu0 %v3220_v60  ;;  %1176 = vmatprep.mubr.bf16.mxu1 %v3220_v60 }
  0xb9   :  { %v1030_v29 = vpop.permute.xlu0 %1029 }
  0xe9   :  { %v1056_v8 = vpop.permute.xlu0 %1055 }
  0xea   :  { %v1058_v43 = vmul.f32 %v1056_v8, %v2572_v23  ;;  %v1060_v60 = vmul.f32 %v1056_v8, %v2515_v55 }
 0x16a   :  { %v937_v15 = vpop.f32.mrb[0].mxu0  ;;  %v1019_v19 = vpop.f32.mrb[0].mxu1 }
 0x16b   :  { %v1035_v4 = vrot.slane %v937_v15, %v2556_v11  ;;  %v1043_v52 = vrot.slane %v1019_v19, %v2556_v11  ;;  %v939_v57 = vpop.f32.mrb[1].mxu0  ;;  %v1021_v61 = vpop.f32.mrb[1].mxu1  ;;  %v1059_v15 = vmul.f32 %v1056_v8, %v2513_v54  ;;  %v1061_v19 = vmul.f32 %v1056_v8, %v2584_v31 }
 0x16c   :  { %v1039_v0 = vrot.slane %v939_v57, %v2556_v11  ;;  %v1047_v21 = vrot.slane %v1021_v61, %v2556_v11  ;;  %v941_v53 = vpop.f32.mrb[2].mxu0  ;;  %v1023_v62 = vpop.f32.mrb[2].mxu1 }
 0x16d   :  { %v1048_v50 = vmul.f32 %v1035_v4, %v1030_v29  ;;  %v1050_v37 = vmul.f32 %v1043_v52, %v1030_v29  ;;  %v942_v46 = vpop.f32.mrb[3].mxu0  ;;  %v1024_v48 = vpop.f32.mrb[3].mxu1 }
 0x16e   :  { %v1049_v44 = vmul.f32 %v1039_v0, %v1030_v29  ;;  %v1051_v17 = vmul.f32 %v1047_v21, %v1030_v29  ;;  %v1070_v53 = vpop.permute.xlu1 %1069  ;;  %v1080_v0 = vld [vmem:[%s3057_s5] sm:$0x3]  ;;  %v3249_v21 = vld [vmem:[#allocation38_spill] sm:$0xff] }
 0x16f   :  { %v1062_v41 = vadd.f32 %v1058_v43, %v1048_v50  ;;  %v1064_v57 = vadd.f32 %v1060_v60, %v1050_v37  ;;  %v2255_v60 = vld [vmem:[#allocation3 + $0x2c] ss:$16 sps:$4 sm:$0xff]  }
 0x170   :  { %v1063_v47 = vadd.f32 %v1059_v15, %v1049_v44  ;;  %v1065_v61 = vadd.f32 %v1061_v19, %v1051_v17  ;;  %v3250_v17 = vld [vmem:[#allocation39_spill] sm:$0xff]  ;;  %v3251_v15 = vld [vmem:[#allocation40_spill] sm:$0xff] }
 0x171   :  { %v1072_v62 = vadd.f32 %v1070_v53, %v1062_v41  ;;  %v1074_v11 = vadd.f32 %v1070_v53, %v1064_v57  ;;  %v1081_v41 = vpack.c.bf16 %v1080_v0, %v1080_v0  ;;  %v2256_v19 = vld [vmem:[#allocation3 + $0x28] ss:$16 sps:$4 sm:$0xff]  }
 0x172   :  { %v1073_v23 = vadd.f32 %v1070_v53, %v1063_v47  ;;  %v1075_v39 = vadd.f32 %v1070_v53, %v1065_v61  ;;  %v3242_v47 = vld [vmem:[#allocation76_spill] sm:$0xff]  ;;  %v3252_v57 = vld [vmem:[#allocation41_spill] sm:$0xff]  ;;  %v3253_v53 = vld [vmem:[#allocation42_spill] sm:$0xff] }
 0x173   :  { %v1076_v55 = vmax.f32 %v1072_v62, 0.0  ;;  %v1078_v4 = vmax.f32 %v1074_v11, 0.0  ;;  %v3248_v11 = vld [vmem:[#allocation82_spill] sm:$0xff] }
 0x174   :  { %v1077_v52 = vmax.f32 %v1073_v23, 0.0  ;;  %v1079_v46 = vmax.f32 %v1075_v39, 0.0  ;;  %v3240_v39 = vld [vmem:[#allocation74_spill] sm:$0xff]  ;;  %v3254_v23 = vld [vmem:[#allocation43_spill] sm:$0xff] }
 0x175   :  { %v1082_v48 = vpack.c.bf16 %v1076_v55, %v1076_v55  ;;  %v1084_v54 = vpack.c.bf16 %v1078_v4, %v1078_v4  ;;  %v2257_v61 = vld [vmem:[#allocation3 + $0x4c] ss:$16 sps:$4 sm:$0xff]   ;;  %v2258_v62 = vld [vmem:[#allocation3 + $0x48] ss:$16 sps:$4 sm:$0xff]  }
 0x176   :  { %v1083_v43 = vpack.c.bf16 %v1077_v52, %v1077_v52  ;;  %v1085_v50 = vpack.c.bf16 %v1079_v46, %v1079_v46  ;;  %v2259_v55 = vld [vmem:[#allocation3 + $0x6c] ss:$16 sps:$4 sm:$0xff]   ;;  %v2260_v52 = vld [vmem:[#allocation3 + $0x68] ss:$16 sps:$4 sm:$0xff]  }
 0x177   :  { %v1092_v44 = vsel %vm1090_vm0, %v1082_v48, 0  ;;  %v1098_v8 = vsel %vm1090_vm0, %v1084_v54, 0  ;;  %v3255_v4 = vld [vmem:[#allocation44_spill] sm:$0xff]  ;;  %v3256_v46 = vld [vmem:[#allocation45_spill] sm:$0xff]  ;;  %v3257_v54 = vld [vmem:[#allocation46_spill] sm:$0xff] }
 0x178   :  { %1931 = vmatprep.subr.msk.bf16.mxu0 %vm1090_vm0, %v1083_v43  ;;  %1933 = vmatprep.subr.msk.bf16.mxu1 %vm1090_vm0, %v1085_v50  ;;  %v2261_v48 = vld [vmem:[#allocation3 + $0x8c] ss:$16 sps:$4 sm:$0xff]   ;;  %v2262_v0 = vld [vmem:[#allocation3 + $0x88] ss:$16 sps:$4 sm:$0xff]  }
 0x179   :  { %1104 = vmatpush1.bf16.msra.mxu0 %v1092_v44  ;;  %1145 = vmatpush1.bf16.msra.mxu1 %v1098_v8  ;;  %v3258_v43 = vld [vmem:[#allocation47_spill] sm:$0xff]  ;;  %v2263_v50 = vld [vmem:[#allocation3 + $0xac] ss:$16 sps:$4 sm:$0xff]  }
 0x17a   :  { %1201 = vmatprep.subr.bf16.mxu0 %v2422_v1  ;;  %1242 = vmatprep.subr.bf16.mxu1 %v2580_v27  ;;  %v3221_v1 = vld [vmem:[#allocation9_spill] sm:$0xff]  ;;  %v3259_v44 = vld [vmem:[#allocation48_spill] sm:$0xff] }
 0x17b   :  { %v2264_v8 = vld [vmem:[#allocation3 + $0xa8] ss:$16 sps:$4 sm:$0xff]  }
 0x17c   :  { %1932 = vmatmul.mubr.msk.bf16.vlgmr.msra.gmra.mrb[4].mxu0 %vm1086_vm1, %v1081_v41  ;;  %1934 = vmatmul.mubr.msk.bf16.vlgmr.msra.gmra.mrb[4].mxu1 %vm1086_vm1, %v1081_v41  ;;  %v3260_v41 = vld [vmem:[#allocation49_spill] sm:$0xff] }
 0x17d   :  { %1202 = vmatpush1.bf16.msra.mxu0 %v2425_v3  ;;  %1243 = vmatpush1.bf16.msra.mxu1 %v2586_v33  ;;  %v3222_v3 = vld [vmem:[#allocation56_spill] sm:$0xff] }
 0x17e   :  { %1203 = vmatprep.subr.bf16.mxu0 %v2427_v5  ;;  %1244 = vmatprep.subr.bf16.mxu1 %v2596_v38  ;;  %v3223_v5 = vld [vmem:[#allocation11_spill] sm:$0xff] }
 0x181   :  { %1204 = vmatpush1.bf16.msra.mxu0 %v2430_v7  ;;  %1245 = vmatpush1.bf16.msra.mxu1 %v2602_v49  ;;  %v3224_v7 = vld [vmem:[#allocation58_spill] sm:$0xff] }
 0x182   :  { %1205 = vmatprep.subr.bf16.mxu0 %v2434_v10  ;;  %1246 = vmatprep.subr.bf16.mxu1 %v2610_v59  ;;  %v3226_v10 = vld [vmem:[#allocation60_spill] sm:$0xff] }
 0x185   :  { %1206 = vmatpush1.bf16.msra.mxu0 %v2437_v12  ;;  %1247 = vmatpush1.bf16.msra.mxu1 %v2614_v9  ;;  %v3225_v9 = vld [vmem:[#allocation13_spill] sm:$0xff]  ;;  %v3227_v12 = vld [vmem:[#allocation15_spill] sm:$0xff] }
 0x186   :  { %1207 = vmatprep.subr.bf16.mxu0 %v2440_v14  ;;  %1248 = vmatprep.subr.bf16.mxu1 %v2622_v25  ;;  %v3228_v14 = vld [vmem:[#allocation62_spill] sm:$0xff] }
 0x189   :  { %1208 = vmatpush1.bf16.msra.mxu0 %v2443_v16  ;;  %1249 = vmatpush1.bf16.msra.mxu1 %v2626_v13  ;;  %v3229_v16 = vld [vmem:[#allocation17_spill] sm:$0xff]  ;;  %v2253_v13 = vld [vmem:[#allocation3 + $0xc] ss:$16 sps:$4 sm:$0xff]  }
 0x18a   :  { %1209 = vmatprep.subr.bf16.mxu0 %v2446_v18  ;;  %1250 = vmatprep.subr.bf16.mxu1 %v2634_v6  ;;  %v3230_v18 = vld [vmem:[#allocation64_spill] sm:$0xff] }
 0x18b   :  { %v3247_v6 = vld [vmem:[#allocation36_spill] sm:$0xff] }
 0x18d   :  { %1210 = vmatpush1.bf16.msra.mxu0 %v2449_v20  ;;  %1251 = vmatpush1.bf16.msra.mxu1 %v2638_v63  ;;  %v3231_v20 = vld [vmem:[#allocation19_spill] sm:$0xff]  ;;  %v3245_v63 = vld [vmem:[#allocation34_spill] sm:$0xff] }
 0x18e   :  { %1211 = vmatprep.subr.bf16.mxu0 %v2452_v22  ;;  %1252 = vmatprep.subr.bf16.mxu1 %v2646_v58  ;;  %v3232_v22 = vld [vmem:[#allocation66_spill] sm:$0xff] }
 0x18f   :  { %v3244_v58 = vld [vmem:[#allocation78_spill] sm:$0xff] }
 0x191   :  { %1212 = vmatpush1.bf16.msra.mxu0 %v2455_v24  ;;  %1253 = vmatpush1.bf16.msra.mxu1 %v2650_v51  ;;  %v3233_v24 = vld [vmem:[#allocation21_spill] sm:$0xff]  ;;  %v3243_v51 = vld [vmem:[#allocation31_spill] sm:$0xff] }
 0x192   :  { %1213 = vmatprep.subr.bf16.mxu0 %v2458_v26  ;;  %1254 = vmatprep.subr.bf16.mxu1 %v2658_v45  ;;  %v3234_v26 = vld [vmem:[#allocation68_spill] sm:$0xff]  ;;  %v3241_v45 = vld [vmem:[#allocation29_spill] sm:$0xff] }
 0x195   :  { %1214 = vmatpush1.bf16.msra.mxu0 %v2461_v28  ;;  %1255 = vmatpush1.bf16.msra.mxu1 %v2665_v2  ;;  %v3235_v28 = vld [vmem:[#allocation23_spill] sm:$0xff]  ;;  %v3246_v2 = vld [vmem:[#allocation80_spill] sm:$0xff] }
 0x196   :  { %1215 = vmatprep.subr.bf16.mxu0 %v2464_v30  ;;  %1256 = vmatprep.subr.bf16.mxu1 %v2675_v35  ;;  %v3236_v30 = vld [vmem:[#allocation70_spill] sm:$0xff] }
 0x199   :  { %1216 = vmatpush1.bf16.msra.mxu0 %v2467_v32  ;;  %1257 = vmatpush1.bf16.msra.mxu1 %v2683_v40  ;;  %v3237_v32 = vld [vmem:[#allocation25_spill] sm:$0xff] }
 0x19a   :  { %1217 = vmatprep.subr.bf16.mxu0 %v2470_v34  ;;  %1258 = vmatprep.subr.bf16.mxu1 %v2687_v42  ;;  %v3238_v34 = vld [vmem:[#allocation72_spill] sm:$0xff] }
 0x19d   :  { %1218 = vmatpush1.bf16.msra.mxu0 %v2473_v36  ;;  %1259 = vmatpush1.bf16.msra.mxu1 %v2695_v56  ;;  %v3239_v36 = vld [vmem:[#allocation27_spill] sm:$0xff] }
 0x19e   :  { %1219 = vmatprep.subr.bf16.mxu0 %v3221_v1  ;;  %1260 = vmatprep.subr.bf16.mxu1 %v3222_v3  ;;  %v2254_v56 = vld [vmem:[#allocation3 + $0x8] ss:$16 sps:$4 sm:$0xff]   ;;  %v2265_v1 = vld [vmem:[#allocation3 + $0xcc] ss:$16 sps:$4 sm:$0xff]  }
 0x19f   :  { %v3261_v3 = vld [vmem:[#allocation50_spill] sm:$0xff] }
 0x1a1   :  { %1220 = vmatpush1.bf16.msra.mxu0 %v3223_v5  ;;  %1261 = vmatpush1.bf16.msra.mxu1 %v3224_v7  ;;  %v2266_v5 = vld [vmem:[#allocation3 + $0xc8] ss:$16 sps:$4 sm:$0xff]  }
 0x1a2   :  { %1221 = vmatprep.subr.bf16.mxu0 %v3225_v9  ;;  %1262 = vmatprep.subr.bf16.mxu1 %v3226_v10  ;;  %v3262_v7 = vld [vmem:[#allocation51_spill] sm:$0xff]  ;;  %v2267_v9 = vld [vmem:[#allocation3 + $0xec] ss:$16 sps:$4 sm:$0xff]  }
 0x1a3   :  { %v3263_v10 = vld [vmem:[#allocation52_spill] sm:$0xff] }
 0x1a5   :  { %1222 = vmatpush1.bf16.msra.mxu0 %v3227_v12  ;;  %1263 = vmatpush1.bf16.msra.mxu1 %v3228_v14  ;;  %v2268_v12 = vld [vmem:[#allocation3 + $0xe8] ss:$16 sps:$4 sm:$0xff]  }
 0x1a6   :  { %1223 = vmatprep.subr.bf16.mxu0 %v3229_v16  ;;  %1264 = vmatprep.subr.bf16.mxu1 %v3230_v18  ;;  %v3264_v14 = vld [vmem:[#allocation53_spill] sm:$0xff]  ;;  %v2269_v16 = vld [vmem:[#allocation3 + $0x10c] ss:$16 sps:$4 sm:$0xff]  }
 0x1a7   :  { %v3265_v18 = vld [vmem:[#allocation54_spill] sm:$0xff] }
 0x1a9   :  { %1224 = vmatpush1.bf16.msra.mxu0 %v3231_v20  ;;  %1265 = vmatpush1.bf16.msra.mxu1 %v3232_v22  ;;  %v2270_v20 = vld [vmem:[#allocation3 + $0x108] ss:$16 sps:$4 sm:$0xff]  }
 0x1aa   :  { %1225 = vmatprep.subr.bf16.mxu0 %v3233_v24  ;;  %1266 = vmatprep.subr.bf16.mxu1 %v3234_v26  ;;  %v3266_v22 = vld [vmem:[#allocation55_spill] sm:$0xff]  ;;  %v3267_v24 = vld [vmem:[#allocation10_spill] sm:$0xff]  ;;  %v3268_v26 = vld [vmem:[#allocation57_spill] sm:$0xff] }
 0x1ad   :  { %1226 = vmatpush1.bf16.msra.mxu0 %v3235_v28  ;;  %1267 = vmatpush1.bf16.msra.mxu1 %v3236_v30  ;;  %v3269_v28 = vld [vmem:[#allocation12_spill] sm:$0xff]  ;;  %v3270_v30 = vld [vmem:[#allocation59_spill] sm:$0xff] }
 0x1ae   :  { %1227 = vmatprep.subr.bf16.mxu0 %v3237_v32  ;;  %1268 = vmatprep.subr.bf16.mxu1 %v3238_v34  ;;  %v3271_v32 = vld [vmem:[#allocation14_spill] sm:$0xff]  ;;  %v3272_v34 = vld [vmem:[#allocation61_spill] sm:$0xff] }
 0x1b1   :  { %1228 = vmatpush1.bf16.msra.mxu0 %v3239_v36  ;;  %1269 = vmatpush1.bf16.msra.mxu1 %v3240_v39  ;;  %v3273_v36 = vld [vmem:[#allocation16_spill] sm:$0xff]  ;;  %v3274_v39 = vld [vmem:[#allocation63_spill] sm:$0xff] }
 0x1b2   :  { %1229 = vmatprep.subr.bf16.mxu0 %v3241_v45  ;;  %1270 = vmatprep.subr.bf16.mxu1 %v3242_v47  ;;  %v3275_v45 = vld [vmem:[#allocation18_spill] sm:$0xff]  ;;  %v3276_v47 = vld [vmem:[#allocation65_spill] sm:$0xff] }
 0x1b5   :  { %1230 = vmatpush1.bf16.msra.mxu0 %v3243_v51  ;;  %1271 = vmatpush1.bf16.msra.mxu1 %v3244_v58  ;;  %v3277_v51 = vld [vmem:[#allocation20_spill] sm:$0xff]  ;;  %v3278_v58 = vld [vmem:[#allocation67_spill] sm:$0xff] }
 0x1b6   :  { %1231 = vmatprep.subr.bf16.mxu0 %v3245_v63  ;;  %1272 = vmatprep.subr.bf16.mxu1 %v3246_v2  ;;  %v3279_v63 = vld [vmem:[#allocation22_spill] sm:$0xff]  ;;  %v3280_v2 = vld [vmem:[#allocation69_spill] sm:$0xff] }
 0x1b9   :  { %1232 = vmatpush1.bf16.msra.mxu0 %v3247_v6  ;;  %1273 = vmatpush1.bf16.msra.mxu1 %v3248_v11  ;;  %v3281_v6 = vld [vmem:[#allocation24_spill] sm:$0xff]  ;;  %v3282_v11 = vld [vmem:[#allocation71_spill] sm:$0xff] }
 0x1ba   :  { %1283 = vmatprep.subr.bf16.mxu0 %v2253_v13  ;;  %1324 = vmatprep.subr.bf16.mxu1 %v3249_v21  ;;  %v3283_v13 = vld [vmem:[#allocation26_spill] sm:$0xff]  ;;  %v3284_v21 = vld [vmem:[#allocation73_spill] sm:$0xff] }
 0x24f   :  { %v2869_v25 = vpop.f32.mrb[4].mxu0  ;;  %v2871_v27 = vpop.f32.mrb[4].mxu1 }
 0x250   :  { %v2875_v29 = vpack.c.bf16 %v2871_v27, %v2871_v27  ;;  %v2877_v31 = vpop.f32.mrb[5].mxu0  ;;  %v2879_v33 = vpop.f32.mrb[5].mxu1  ;;  %v2887_v59 = vpack.c.bf16 %v2869_v25, %v2869_v25 }
 0x251   :  { %v1186_v37 = vpack.c.bf16 %v2877_v31, %v2877_v31  ;;  %v1188_v38 = vpack.c.bf16 %v2879_v33, %v2879_v33  ;;  %v1141_v42 = vpop.f32.mrb[6].mxu0  ;;  %v1182_v49 = vpop.f32.mrb[6].mxu1 }
 0x252   :  { %v1142_v35 = vpop.f32.mrb[7].mxu0  ;;  %v1183_v40 = vpop.f32.mrb[7].mxu1  ;;  %v3287_v42 = vld [vmem:[#allocation30_spill] sm:$0xff]  ;;  %v3288_v49 = vld [vmem:[#allocation77_spill] sm:$0xff] }
 0x253   :  { %1233 = vmatprep.mubr.bf16.mxu0 %v1186_v37  ;;  %1274 = vmatprep.mubr.bf16.mxu1 %v1188_v38  ;;  %v3289_v35 = vld [vmem:[#allocation33_spill] sm:$0xff]  ;;  %v3290_v40 = vld [vmem:[#allocation79_spill] sm:$0xff] }
 0x254   :  { %1234 = vmatmul.mubr.bf16.vlgmr.msra.gmra.mrb[8].mxu0 %v2887_v59  ;;  %1275 = vmatmul.mubr.bf16.vlgmr.msra.gmra.mrb[8].mxu1 %v2875_v29 }
 0x255   :  { %1284 = vmatpush1.bf16.msra.mxu0 %v2254_v56  ;;  %1325 = vmatpush1.bf16.msra.mxu1 %v3250_v17  ;;  %v3291_v56 = vld [vmem:[#allocation35_spill] sm:$0xff]  ;;  %v3292_v17 = vld [vmem:[#allocation81_spill] sm:$0xff] }
 0x256   :  { %1285 = vmatprep.subr.bf16.mxu0 %v2255_v60  ;;  %1315 = vmatprep.mubr.bf16.mxu0 %v1186_v37  ;;  %v3285_v37 = vld [vmem:[#allocation28_spill] sm:$0xff]  ;;  %v3293_v60 = vld [vmem:[#allocation37_spill] sm:$0xff] }
 0x257   :  { %1326 = vmatprep.subr.bf16.mxu1 %v3251_v15  ;;  %1356 = vmatprep.mubr.bf16.mxu1 %v1188_v38  ;;  %v3286_v38 = vld [vmem:[#allocation75_spill] sm:$0xff] }
 0x258   :  { %v3294_v15 = vld [vmem:[#allocation83_spill] sm:$0xff] }
 0x259   :  { %1286 = vmatpush1.bf16.msra.mxu0 %v2256_v19  ;;  %1327 = vmatpush1.bf16.msra.mxu1 %v3252_v57  ;;  %v2228_v19 = vld [vmem:[%s3059_s7 + $0x40] sm:$0xff]  }
 0x25a   :  { %1287 = vmatprep.subr.bf16.mxu0 %v2257_v61  ;;  %1328 = vmatprep.subr.bf16.mxu1 %v3253_v53  ;;  %v2229_v57 = vld [vmem:[%s3059_s7] sm:$0xff]   ;;  %v2230_v61 = vld [vmem:[%s3059_s7 + $0x48] sm:$0xff]   ;;  %v2233_v53 = vld [vmem:[%s3059_s7 + $0x10] sm:$0xff]  }
 0x25d   :  { %1288 = vmatpush1.bf16.msra.mxu0 %v2258_v62  ;;  %1329 = vmatpush1.bf16.msra.mxu1 %v3254_v23  ;;  %v2234_v62 = vld [vmem:[%s3059_s7 + $0x58] sm:$0xff]  }
 0x25e   :  { %1289 = vmatprep.subr.bf16.mxu0 %v2259_v55  ;;  %1330 = vmatprep.subr.bf16.mxu1 %v3255_v4  ;;  %v2235_v23 = vld [vmem:[%s3059_s7 + $0x18] sm:$0xff]   ;;  %v2236_v55 = vld [vmem:[%s3059_s7 + $0x60] sm:$0xff]  }
 0x25f   :  { %v2237_v4 = vld [vmem:[%s3059_s7 + $0x20] sm:$0xff]  }
 0x261   :  { %1290 = vmatpush1.bf16.msra.mxu0 %v2260_v52  ;;  %1331 = vmatpush1.bf16.msra.mxu1 %v3256_v46  ;;  %v2238_v52 = vld [vmem:[%s3059_s7 + $0x68] sm:$0xff]  }
 0x262   :  { %1291 = vmatprep.subr.bf16.mxu0 %v2261_v48  ;;  %1332 = vmatprep.subr.bf16.mxu1 %v3257_v54  ;;  %v2239_v46 = vld [vmem:[%s3059_s7 + $0x28] sm:$0xff]   ;;  %v2240_v48 = vld [vmem:[%s3059_s7 + $0x70] sm:$0xff]  }
 0x263   :  { %v2241_v54 = vld [vmem:[%s3059_s7 + $0x30] sm:$0xff]  }
 0x265   :  { %1292 = vmatpush1.bf16.msra.mxu0 %v2262_v0  ;;  %1333 = vmatpush1.bf16.msra.mxu1 %v3258_v43  ;;  %v2242_v0 = vld [vmem:[%s3059_s7 + $0x78] sm:$0xff]  }
 0x266   :  { %1293 = vmatprep.subr.bf16.mxu0 %v2263_v50  ;;  %1334 = vmatprep.subr.bf16.mxu1 %v3259_v44  ;;  %v2243_v43 = vld [vmem:[%s3059_s7 + $0x38] sm:$0xff]   ;;  %v2244_v50 = vld [vmem:[%s3061_s9] sm:$0xff]   ;;  %v2323_v44 = vmov 0.0  }
 0x269   :  { %1294 = vmatpush1.bf16.msra.mxu0 %v2264_v8  ;;  %1335 = vmatpush1.bf16.msra.mxu1 %v3260_v41  ;;  %v2245_v8 = vld [vmem:[%s3061_s9 + $0x8] sm:$0xff]   ;;  %v1193_v41 = vrot.slane %v2869_v25, 1 }
 0x26a   :  { %1295 = vmatprep.subr.bf16.mxu0 %v2265_v1  ;;  %1336 = vmatprep.subr.bf16.mxu1 %v3261_v3  ;;  %v1194_v1 = vrot.slane %v2877_v31, 1 }
 0x26d   :  { %1296 = vmatpush1.bf16.msra.mxu0 %v2266_v5  ;;  %1337 = vmatpush1.bf16.msra.mxu1 %v3262_v7 }
 0x26e   :  { %1297 = vmatprep.subr.bf16.mxu0 %v2267_v9  ;;  %1338 = vmatprep.subr.bf16.mxu1 %v3263_v10 }
 0x271   :  { %1298 = vmatpush1.bf16.msra.mxu0 %v2268_v12  ;;  %1339 = vmatpush1.bf16.msra.mxu1 %v3264_v14 }
 0x272   :  { %1299 = vmatprep.subr.bf16.mxu0 %v2269_v16  ;;  %1340 = vmatprep.subr.bf16.mxu1 %v3265_v18 }
 0x275   :  { %1300 = vmatpush1.bf16.msra.mxu0 %v2270_v20  ;;  %1341 = vmatpush1.bf16.msra.mxu1 %v3266_v22 }
 0x276   :  { %1301 = vmatprep.subr.bf16.mxu0 %v3267_v24  ;;  %1342 = vmatprep.subr.bf16.mxu1 %v3268_v26  ;;  %v1369_v26 = vpop.permute.xlu1 %1368 }
 0x279   :  { %1302 = vmatpush1.bf16.msra.mxu0 %v3269_v28  ;;  %1343 = vmatpush1.bf16.msra.mxu1 %v3270_v30  ;;  %v1195_v28 = vrot.slane %v2871_v27, 1  ;;  %v1196_v30 = vrot.slane %v2879_v33, 1 }
 0x27a   :  { %1303 = vmatprep.subr.bf16.mxu0 %v3271_v32  ;;  %1344 = vmatprep.subr.bf16.mxu1 %v3272_v34 }
 0x27d   :  { %1304 = vmatpush1.bf16.msra.mxu0 %v3273_v36  ;;  %1345 = vmatpush1.bf16.msra.mxu1 %v3274_v39 }
 0x27e   :  { %1305 = vmatprep.subr.bf16.mxu0 %v3275_v45  ;;  %1346 = vmatprep.subr.bf16.mxu1 %v3276_v47 }
 0x281   :  { %1306 = vmatpush1.bf16.msra.mxu0 %v3277_v51  ;;  %1347 = vmatpush1.bf16.msra.mxu1 %v3278_v58  ;;  %v3295_v51 = vld [vmem:[#allocation32_spill] sm:$0xff] }
 0x282   :  { %1307 = vmatprep.subr.bf16.mxu0 %v3279_v63  ;;  %1348 = vmatprep.subr.bf16.mxu1 %v3280_v2  ;;  %v1374_v58 = vrot.slane %v1369_v26, %v3295_v51 }
 0x285   :  { %1308 = vmatpush1.bf16.msra.mxu0 %v3281_v6  ;;  %1349 = vmatpush1.bf16.msra.mxu1 %v3282_v11 }
 0x286   :  { %1309 = vmatprep.subr.bf16.mxu0 %v3283_v13  ;;  %1350 = vmatprep.subr.bf16.mxu1 %v3284_v21 }
 0x289   :  { %1310 = vmatpush1.bf16.msra.mxu0 %v3285_v37  ;;  %1351 = vmatpush1.bf16.msra.mxu1 %v3286_v38 }
 0x28a   :  { %1311 = vmatprep.subr.bf16.mxu0 %v3287_v42  ;;  %1352 = vmatprep.subr.bf16.mxu1 %v3288_v49 }
 0x28d   :  { %1312 = vmatpush1.bf16.msra.mxu0 %v3289_v35  ;;  %1353 = vmatpush1.bf16.msra.mxu1 %v3290_v40 }
 0x28e   :  { %1313 = vmatprep.subr.bf16.mxu0 %v3291_v56  ;;  %1354 = vmatprep.subr.bf16.mxu1 %v3292_v17  ;;  %v2246_v56 = vld [vmem:[%s3061_s9 + $0x10] sm:$0xff]   ;;  %v2247_v17 = vld [vmem:[%s3061_s9 + $0x18] ss:$0 sps:$4 sm:$0x33]  }
 0x291   :  { %1314 = vmatpush1.bf16.msra.mxu0 %v3293_v60  ;;  %1355 = vmatpush1.bf16.msra.mxu1 %v3294_v15  ;;  %v2324_v60 = vmov 65535  }
 0x292   :  { %1963 = vmatprep.subr.bf16.mxu0 %v2228_v19  ;;  %1994 = vmatprep.subr.bf16.mxu1 %v2323_v44  ;;  %v1607_v15 = vsel %vm1385_vm2, 4294967295, %v2324_v60 }
 0x293   :  { %v1608_v19 = vsel %vm1606_vm3, %v1607_v15, 0 }
 0x294   :  { %1316 = vmatmul.mubr.bf16.vlgmr.msra.gmra.mrb[12].mxu0 %v2887_v59  ;;  %1357 = vmatmul.mubr.bf16.vlgmr.msra.gmra.mrb[12].mxu1 %v2875_v29  ;;  %v2231_v59 = vld [vmem:[%s3059_s7 + $0x8] sm:$0xff]   ;;  %v2232_v29 = vld [vmem:[%s3059_s7 + $0x50] sm:$0xff]  }
 0x295   :  { %1964 = vmatpush3.bf16.msra.mxu0 %v2229_v57  ;;  %1995 = vmatpush3.bf16.msra.mxu1 %v2244_v50  ;;  %v1610_v57 = vand.u32 %v2247_v17, %v1608_v19 }
 0x296   :  { %1965 = vmatprep.subr.bf16.mxu0 %v2230_v61  ;;  %1996 = vmatprep.subr.bf16.mxu1 %v2323_v44 }
 0x297   :  { %2002 = vmatprep.mubr.msk.bf16.mxu1 %vm2325_vm4, %v2323_v44 }
 0x299   :  { %1966 = vmatpush3.bf16.msra.mxu0 %v2231_v59  ;;  %1997 = vmatpush3.bf16.msra.mxu1 %v2245_v8  ;;  %v1935_v59 = vld [vmem:[%s3060_s8] ss:$0 sm:$0xff] }
 0x29a   :  { %1967 = vmatprep.subr.bf16.mxu0 %v2232_v29  ;;  %1998 = vmatprep.subr.bf16.mxu1 %v2323_v44 }
 0x29d   :  { %1968 = vmatpush3.bf16.msra.mxu0 %v2233_v53  ;;  %1999 = vmatpush3.bf16.msra.mxu1 %v2246_v56 }
 0x29e   :  { %1969 = vmatprep.subr.bf16.mxu0 %v2234_v62  ;;  %2000 = vmatprep.subr.bf16.mxu1 %v2323_v44 }
 0x2a1   :  { %1970 = vmatpush3.bf16.msra.mxu0 %v2235_v23  ;;  %2001 = vmatpush3.bf16.msra.mxu1 %v1610_v57 }
 0x2a2   :  { %1971 = vmatprep.subr.bf16.mxu0 %v2236_v55  ;;  %2006 = vmatprep.subr.bf16.mxu1 %v2323_v44 }
 0x2a5   :  { %1972 = vmatpush3.bf16.msra.mxu0 %v2237_v4 }
 0x2a6   :  { %1973 = vmatprep.subr.bf16.mxu0 %v2238_v52 }
 0x2a9   :  { %1974 = vmatpush3.bf16.msra.mxu0 %v2239_v46  ;;  %v2248_v46 = vld [vmem:[%s3063_s11] sm:$0x1f]  }
 0x2aa   :  { %1975 = vmatprep.subr.bf16.mxu0 %v2240_v48  ;;  %v1674_v48 = vsel %vm1672_vm6, %v2248_v46, 0 }
 0x2ad   :  { %1976 = vmatpush3.bf16.msra.mxu0 %v2241_v54  ;;  %v1952_v54 = vld [vmem:[%s3062_s10] ss:$0 sm:$0xff] }
 0x2ae   :  { %1977 = vmatprep.subr.bf16.mxu0 %v2242_v0 }
 0x2b1   :  { %1978 = vmatpush3.bf16.msra.mxu0 %v2243_v43 }
 0x327   :  { %v1235_v3 = vpop.f32.mrb[8].mxu0  ;;  %v1276_v5 = vpop.f32.mrb[8].mxu1 }
 0x328   :  { %v1236_v7 = vadd.f32 %v1235_v3, %v1193_v41  ;;  %v1237_v9 = vpop.f32.mrb[9].mxu0  ;;  %v1278_v10 = vpop.f32.mrb[9].mxu1 }
 0x329   :  { %v1238_v12 = vadd.f32 %v1237_v9, %v1194_v1  ;;  %v1239_v14 = vpop.f32.mrb[10].mxu0  ;;  %v1280_v16 = vpop.f32.mrb[10].mxu1  ;;  %v1958_v9 = vld [vmem:[%s3064_s12] ss:$0 sm:$0xff]  ;;  %s2326_s12 = smov [#allocation6]  }
 0x32a   :  { %v1277_v18 = vadd.f32 %v1276_v5, %v1236_v7  ;;  %v1240_v20 = vpop.f32.mrb[11].mxu0  ;;  %v1281_v22 = vpop.f32.mrb[11].mxu1  ;;  %v1718_v5 = vld [vmem:[%s3065_s13] sm:$0x1]  ;;  %s1794_s13 = sshll.u32 %s2326_s12, 4  ;;  %s1795_s13 = int_to_ptr.vmem [resolvable:$true] %s1794_s13 }
 0x32b   :  { %v1279_v24 = vadd.f32 %v1278_v10, %v1238_v12  ;;  %v1731_v7 = vsel %vm1385_vm2, %v1718_v5, 0  ;;  %p2298_p9 = scmp.lt.s32.totalorder %s1795_s13, %s1795_s13 }
 0x32c   :  { %v1375_v27 = vadd.f32 %v1374_v58, %v1277_v18 }
 0x32d   :  { %v1376_v33 = vadd.f32 %v1374_v58, %v1279_v24 }
 0x367   :  { %v1317_v25 = vpop.f32.mrb[12].mxu0  ;;  %v1358_v32 = vpop.f32.mrb[12].mxu1 }
 0x368   :  { %v1318_v31 = vadd.f32 %v1317_v25, %v1195_v28  ;;  %v1319_v34 = vpop.f32.mrb[13].mxu0  ;;  %v1360_v36 = vpop.f32.mrb[13].mxu1 }
 0x369   :  { %v1320_v39 = vadd.f32 %v1319_v34, %v1196_v30  ;;  %v1321_v45 = vpop.f32.mrb[14].mxu0  ;;  %v1362_v47 = vpop.f32.mrb[14].mxu1 }
 0x36a   :  { %v1359_v63 = vadd.f32 %v1358_v32, %v1318_v31  ;;  %v1322_v2 = vpop.f32.mrb[15].mxu0  ;;  %v1363_v6 = vpop.f32.mrb[15].mxu1 }
 0x36b   :  { %v1361_v11 = vadd.f32 %v1360_v36, %v1320_v39 }
 0x36c   :  { %v1377_v13 = vadd.f32 %v1374_v58, %v1359_v63 }
 0x36d   :  { %v1378_v21 = vadd.f32 %v1374_v58, %v1361_v11 }
 0x36e   :  { %v1381_v37 = vrot.slane %v1377_v13, 7 }
 0x36f   :  { %v1382_v38 = vrot.slane %v1378_v21, 7 }
 0x370   :  { %v1386_v42 = vsel %vm1385_vm2, %v1375_v27, %v1381_v37 }
 0x371   :  { %v1387_v49 = vsel %vm1385_vm2, %v1376_v33, %v1382_v38  ;;  %v1388_v40 = vpack.c.bf16 %v1386_v42, %v1386_v42 }
 0x372   :  { %v1389_v35 = vpack.c.bf16 %v1387_v49, %v1387_v49 }
 0x374   :  { %1557 = vmatprep.mubr.bf16.mxu0 %v1389_v35 }
 0x375   :  { %1558 = vmatmul.mubr.bf16.vlgmr.msra.gmra.mrb[16].mxu0 %v1388_v40 }
 0x448   :  { %v1979_v61 = vpop.f32.mrb[16].mxu0 }
 0x449   :  { %v1980_v29 = vpop.f32.mrb[17].mxu0 }
 0x44a   :  { %v1981_v53 = vadd.f32 %v1980_v29, %v1979_v61  ;;  %v1982_v62 = vpop.f32.mrb[18].mxu0 }
 0x44b   :  { %v1983_v23 = vpop.f32.mrb[19].mxu0 }
 0x44c   :  { %v1560_v55 = vadd.f32 %v1981_v53, %v1935_v59 }
 0x44e   :  { %v1565_v4 = vmax.f32 %v1560_v55, 0.0 }
 0x450   :  { %v1566_v52 = vpack.c.bf16 %v1565_v4, %v1565_v4 }
 0x452   :  { %2003 = vmatmul.mubr.msk.bf16.vlgmr.msra.gmra.mrb[16].mxu1 %vm1602_vm5, %v1566_v52 }
 0x453   :  { %2008 = vmatprep.mubr.msk.bf16.mxu1 %vm2325_vm4, %v2323_v44  ;;  %2007 = vmatpush3.bf16.msra.mxu1 %v1674_v48 }
 0x454   :  { %2012 = vmatprep.subr.bf16.mxu1 %v2323_v44 }
 0x525   :  { %v1646_v0 = vpop.f32.mrb[16].mxu1 }
 0x526   :  { %v1647_v43 = vadd.f32 %v1952_v54, %v1646_v0  ;;  %v2004_v50 = vpop.f32.mrb[17].mxu1 }
 0x527   :  { %v1649_v8 = vpop.f32.mrb[18].mxu1 }
 0x528   :  { %v1652_v41 = vmax.f32 %v1647_v43, 0.0  ;;  %v2005_v1 = vpop.f32.mrb[19].mxu1 }
 0x52a   :  { %v1653_v3 = vpack.c.bf16 %v1652_v41, %v1652_v41 }
 0x52c   :  { %2009 = vmatmul.mubr.msk.bf16.vlgmr.msra.gmra.mrb[20].mxu1 %vm1668_vm7, %v1653_v3 }
 0x52d   :  { %2014 = vmatprep.mubr.msk.bf16.mxu1 %vm2325_vm4, %v2323_v44  ;;  %2013 = vmatpush3.bf16.msra.mxu1 %v1731_v7  ;;  %v1961_v44 = vld [vmem:[%s3066_s14] ss:$0 sm:$0xff]  ;;  %s2293_s14 = scalar_lea.vmem %s1795_s13, 32 }
 0x52e   :  { %p2294_p8 = scmp.ne.s32.totalorder %s1795_s13, %s2293_s14  ;;  %p2299_p10 = scmp.lt.s32.totalorder %s2293_s14, %s2293_s14 }
 0x530   :  { %p2300_p11 = por %p2299_p10, %p2298_p9 }
 0x532   :  { %p2301_p12 = pnand %p2300_p11, %p2294_p8 }
 0x5ff   :  { %v1710_v10 = vpop.f32.mrb[20].mxu1 }
 0x600   :  { %v1711_v12 = vadd.f32 %v1958_v9, %v1710_v10  ;;  %v2010_v14 = vpop.f32.mrb[21].mxu1 }
 0x601   :  { %v1713_v16 = vpop.f32.mrb[22].mxu1 }
 0x602   :  { %v1716_v18 = vmax.f32 %v1711_v12, 0.0  ;;  %v2011_v20 = vpop.f32.mrb[23].mxu1 }
 0x604   :  { %v1717_v22 = vpack.c.bf16 %v1716_v18, %v1716_v18 }
 0x606   :  { %2015 = vmatmul.mubr.msk.bf16.vlgmr.msra.gmra.mrb[24].mxu1 %vm1726_vm8, %v1717_v22 }
 0x6d9   :  { %v1767_v24 = vpop.f32.mrb[24].mxu1 }
 0x6da   :  { %v1768_v26 = vadd.f32 %v1961_v44, %v1767_v24  ;;  %v2016_v28 = vpop.f32.mrb[25].mxu1 }
 0x6db   :  { %v1770_v30 = vpop.f32.mrb[26].mxu1 }
 0x6dc   :  { %v2017_v25 = vpop.f32.mrb[27].mxu1  ;;  %v1774_v32 = vsel %vm1773_vm9, %v1768_v26, -inf }
 0x6dd   :  { %1775 = vmax.xlane.f32.xlu0 %v1774_v32 }
 0x76a   :  { %v1776_v31 = vpop.xlane.xlu0 %1775 }
 0x76b   :  { %v1777_v34 = vsub.f32 %v1768_v26, %v1776_v31 }
 0x76d   :  { %v1778_v36 = vmul.f32 1.442695, %v1777_v34 }
 0x76f   :  { %2249 = vpow2.f32 %v1778_v36 }
 0x779   :  { %v2250_v39 = vpop.eup %2249 }
 0x77a   :  { %v1780_v45 = vsel %vm1773_vm9, %v2250_v39, 0.0 }
 0x77b   :  { %1781 = vadd.xlane.f32.xlu1 %v1780_v45 }
 0x808   :  { %v1782_v47 = vpop.xlane.xlu1 %1781 }
 0x809   :  { %2251 = vlog2.f32 %v1782_v47 }
 0x813   :  { %v2252_v51 = vpop.eup %2251 }
 0x814   :  { %v1784_v58 = vmul.f32 0.6931472, %v2252_v51 }
 0x816   :  { %v1785_v63 = vadd.f32 %v1784_v58, %v1776_v31 }
 0x818   :  { %v1786_v2 = vsub.f32 %v1768_v26, %v1785_v63 }
 0x81a   :  { %1787 = vst.msk [vmem:[#allocation6] sm:$0x3] %vm1773_vm9, %v1786_v2 }
 0x81b   :  { %2304 = shalt.err (!%p2301_p12)
}
 0x81c   :  { %s2305_s27 = scalar_lea.hbm %s3067_s15, 32 }
 0x81d   :  { %p2306_p13 = scmp.ne.s32.totalorder %s3067_s15, %s2305_s27  ;;  %p2309_p0 = scmp.lt.u32.totalorder %s2305_s27, %s3067_s15 }
 0x81f   :  { %p2311_p1 = pnand %p2309_p0, %p2306_p13 }
 0x821   :  { %2314 = shalt.err (!%p2311_p1)
}
 0x822   :  { %1797 = dma.vmem_to_hbm [thread:$0]  %s1795_s13, 32, %s3067_s15, [#allocation5]  }
 0x823   :  { %2317 = dma.done.wait [#allocation5], 32  }
 0x824   :  { %2318 = vsyncadd [#allocation5], 4294967264 }
 0x825   :  { %1801 = vsyncpa [#allocation4], 1 }
 0x826   :  { %1802 = vsyncpa [#allocation5], 1 }

</bundles_post_ra>
